<compile_context>
chip_gen: v5e
topology: v5e:2x2
jax: 0.10.0
libtpu: 0.0.40
codegen_flags: <defaults>
</compile_context>

<pallas_src>
import jax
import jax.numpy as jnp
from jax import lax
from jax.experimental import pallas as pl
from jax.experimental.pallas import tpu as pltpu

# ----- "args" -----
VOCAB_SIZE = 20
EMBEDDING_DIM = 32
HIDDEN_DIM = 32          # bidirectional => per-direction hidden = 16
NUM_CLASS = 2
BATCH = 2
SEQ = 8
HD = HIDDEN_DIM // 2     # per-direction hidden size
G = 128                  # each GRU gate (r, z, n) padded to its own 128-lane block
C_PAD = 128              # lane-dense padded logits width


def toynet_kernel(idsf_ref, idsb_ref, mf_ref, mb_ref, wg_ref, whh_ref,
                  bgi_ref, bhn_ref, wfc_ref, bfc_ref, logits_ref):
    # idsf/idsb : (S*B, 1) int32 token ids, time-major / time-reversed
    # mf/mb     : (S*B, 1) f32 masks in the same orders
    # wg        : (2V, 3G)  embedding-folded input projection; within each
    #             128-lane gate block, fwd dir occupies lanes [0:Hd), bwd [Hd:2Hd)
    # whh       : (2Hd, 3G) block-diagonal recurrent weights (same column layout)
    # bgi       : (1, 3G)   folded input biases (r,z: b_ih+b_hh ; n: b_ih)
    # bhn       : (1, 2Hd)  hidden n-gate bias [fwd | bwd]
    # wfc       : (2Hd, C_PAD), bfc: (1, C_PAD)
    SB = idsf_ref.shape[0]
    V = wg_ref.shape[0] // 2
    Gk = wg_ref.shape[1] // 3            # 128-lane width of one gate block
    Hd = whh_ref.shape[0] // 2
    B = logits_ref.shape[0]
    S = SB // B
    H2 = 2 * Hd
    neg_big = jnp.float32(-1.0e6)

    # ---- embedding lookup + input projection folded into ONE MXU matmul ----
    # one_hot(ids) * mask  @  (E @ W_ih^T)  ==  (mask * E[ids]) @ W_ih^T
    iota_v = lax.broadcasted_iota(jnp.int32, (SB, V), 1)
    oh_f = (idsf_ref[...] == iota_v).astype(jnp.float32) * mf_ref[...]    # (SB, V)
    oh_b = (idsb_ref[...] == iota_v).astype(jnp.float32) * mb_ref[...]    # (SB, V)
    xcat = jnp.concatenate([oh_f, oh_b], axis=1)                          # (SB, 2V)
    gi = (jnp.dot(xcat, wg_ref[...], preferred_element_type=jnp.float32)
          + bgi_ref[...])                                                 # (SB, 3G)

    whh = whh_ref[...]                                   # (2Hd, 3G), loaded once
    bhn = jnp.broadcast_to(bhn_ref[...], (B, H2))        # hoisted broadcast

    # pooling mask, built once: lanes 0:Hd follow forward output positions,
    # lanes Hd:2Hd follow the backward direction's (time-reversed) positions.
    pool = jnp.concatenate([jnp.broadcast_to(mf_ref[...], (SB, Hd)),
                            jnp.broadcast_to(mb_ref[...], (SB, Hd))], axis=1)

    # hoist every per-step slice (none depend on the recurrence carry)
    gi_t = [gi[t * B:(t + 1) * B, :] for t in range(S)]
    pm_t = [pool[t * B:(t + 1) * B, :] > 0.0 for t in range(S)]

    h = jnp.zeros((B, H2), jnp.float32)
    mx = jnp.full((B, H2), neg_big, jnp.float32)
    for t in range(S):                   # static unroll; serial GRU recurrence
        # single block-diagonal matmul covers both directions' recurrence
        gh = jnp.dot(h, whh, preferred_element_type=jnp.float32)         # (B, 3G)
        # r and z: one fused sigmoid over two vreg-aligned gate blocks
        rz = jax.nn.sigmoid(gi_t[t][:, :2 * Gk] + gh[:, :2 * Gk])
        r = rz[:, 0:H2]
        z = rz[:, Gk:Gk + H2]
        n = jnp.tanh(gi_t[t][:, 2 * Gk:2 * Gk + H2]
                     + r * (gh[:, 2 * Gk:2 * Gk + H2] + bhn))
        h = (1.0 - z) * n + z * h
        mx = jnp.maximum(mx, jnp.where(pm_t[t], h, neg_big))   # online max-pool

    # TODO(synk): nn.Dropout is identity at inference; no stochastic mask applied.
    logits_ref[...] = (jnp.dot(mx, wfc_ref[...], preferred_element_type=jnp.float32)
                       + bfc_ref[...])


def pack_params(p):
    """One-time repack of ToyNet params into the kernel layout (call once)."""
    E = p["embedding"].astype(jnp.float32)                   # (V, EMB)
    V = E.shape[0]
    hi = lax.Precision.HIGHEST
    wg = jnp.zeros((2 * V, 3 * G), jnp.float32)
    whh = jnp.zeros((2 * HD, 3 * G), jnp.float32)
    bgi = jnp.zeros((1, 3 * G), jnp.float32)
    dirs = [(p["w_ih_f"], p["w_hh_f"], p["b_ih_f"], p["b_hh_f"]),
            (p["w_ih_b"], p["w_hh_b"], p["b_ih_b"], p["b_hh_b"])]
    for d, (wi, wh, bi, bh) in enumerate(dirs):
        rlo, hlo, clo = d * V, d * HD, d * HD
        for g in range(3):                                   # gate order: r, z, n
            c0 = g * G + clo
            wi_g = wi[g * HD:(g + 1) * HD]                   # (HD, EMB)
            wh_g = wh[g * HD:(g + 1) * HD]                   # (HD, HD)
            bi_g = bi[g * HD:(g + 1) * HD]
            bh_g = bh[g * HD:(g + 1) * HD]
            wg = wg.at[rlo:rlo + V, c0:c0 + HD].set(jnp.dot(E, wi_g.T, precision=hi))
            whh = whh.at[hlo:hlo + HD, c0:c0 + HD].set(wh_g.T)
            # r,z: fold b_ih+b_hh ; n: only b_ih (b_hh_n stays inside r*(...))
            bgi = bgi.at[0, c0:c0 + HD].set(bi_g + bh_g if g < 2 else bi_g)
    bhn = jnp.concatenate([p["b_hh_f"][2 * HD:], p["b_hh_b"][2 * HD:]])[None, :]
    wfc = jnp.zeros((HIDDEN_DIM, C_PAD), jnp.float32).at[:, :NUM_CLASS].set(p["w_fc"].T)
    bfc = jnp.zeros((1, C_PAD), jnp.float32).at[:, :NUM_CLASS].set(p["b_fc"][None, :])
    return {"wg": wg, "whh": whh, "bgi": bgi, "bhn": bhn, "wfc": wfc, "bfc": bfc}


@jax.jit
def toynet_forward(inputs, masks, packed):
    """inputs: (B, S) int32; masks: (B, S) -> logits (B, NUM_CLASS)."""
    B, S = inputs.shape
    ids_tm = inputs.T.astype(jnp.int32)                    # (S, B) time-major
    m_tm = masks.T.astype(jnp.float32)
    ids_f = ids_tm.reshape(S * B, 1)
    ids_b = ids_tm[::-1].reshape(S * B, 1)                 # time-reversed (bwd dir)
    m_f = m_tm.reshape(S * B, 1)
    m_b = m_tm[::-1].reshape(S * B, 1)

    args = (ids_f, ids_b, m_f, m_b, packed["wg"], packed["whh"], packed["bgi"],
            packed["bhn"], packed["wfc"], packed["bfc"])
    vmem = pl.BlockSpec(memory_space=pltpu.MemorySpace.VMEM)
    logits_pad = pl.pallas_call(
        toynet_kernel,
        out_shape=jax.ShapeDtypeStruct((B, C_PAD), jnp.float32),
        in_specs=[vmem] * len(args),
        out_specs=vmem,
    )(*args)
    # TODO(synk): if batch/seq are scaled up, add a batch grid axis with
    # dimension_semantics=("parallel",) so both v7x TensorCores get work.
    return logits_pad[:, :NUM_CLASS]


def init_params(key):
    ks = jax.random.split(key, 11)
    u = lambda k, shp: jax.random.uniform(k, shp, jnp.float32, -0.1, 0.1)
    return {
        "embedding": u(ks[0], (VOCAB_SIZE, EMBEDDING_DIM)),
        "w_ih_f": u(ks[1], (3 * HD, EMBEDDING_DIM)),
        "w_hh_f": u(ks[2], (3 * HD, HD)),
        "b_ih_f": u(ks[3], (3 * HD,)),
        "b_hh_f": u(ks[4], (3 * HD,)),
        "w_ih_b": u(ks[5], (3 * HD, EMBEDDING_DIM)),
        "w_hh_b": u(ks[6], (3 * HD, HD)),
        "b_ih_b": u(ks[7], (3 * HD,)),
        "b_hh_b": u(ks[8], (3 * HD,)),
        "w_fc":   u(ks[9], (NUM_CLASS, HIDDEN_DIM)),
        "b_fc":   u(ks[10], (NUM_CLASS,)),
    }


def reference_forward(inputs, masks, p):
    """Pure-JAX mirror of the PyTorch ToyNet.forward (z=None, eval mode)."""
    emb = p["embedding"][inputs]
    m = masks[:, :, None].astype(jnp.float32)
    x = emb * m
    B, S, _ = x.shape

    def cell(x_t, h, wih, whh, bih, bhh):
        gi = x_t @ wih.T + bih
        gh = h @ whh.T + bhh
        i_r, i_z, i_n = jnp.split(gi, 3, axis=-1)
        h_r, h_z, h_n = jnp.split(gh, 3, axis=-1)
        r = jax.nn.sigmoid(i_r + h_r)
        z = jax.nn.sigmoid(i_z + h_z)
        n = jnp.tanh(i_n + r * h_n)
        return (1.0 - z) * n + z * h

    h_f = jnp.zeros((B, HD), jnp.float32)
    h_b = jnp.zeros((B, HD), jnp.float32)
    outs_f, outs_b = [], [None] * S
    for t in range(S):
        h_f = cell(x[:, t], h_f, p["w_ih_f"], p["w_hh_f"], p["b_ih_f"], p["b_hh_f"])
        outs_f.append(h_f)
    for t in range(S - 1, -1, -1):
        h_b = cell(x[:, t], h_b, p["w_ih_b"], p["w_hh_b"], p["b_ih_b"], p["b_hh_b"])
        outs_b[t] = h_b
    out = jnp.concatenate([jnp.stack(outs_f, 1), jnp.stack(outs_b, 1)], axis=-1)
    out = out * m + (1.0 - m) * -1.0e6
    pooled = jnp.max(out, axis=1)
    return pooled @ p["w_fc"].T + p["b_fc"]


if __name__ == "__main__":
    key = jax.random.PRNGKey(0)
    kp, ki = jax.random.split(key)
    params = init_params(kp)
    packed = pack_params(params)        # one-time param packing (outside the jitted fwd)

    inputs = jax.random.randint(ki, (BATCH, SEQ), 0, VOCAB_SIZE, dtype=jnp.int32)
    lengths = jnp.array([SEQ, SEQ - 3])
    masks = (jnp.arange(SEQ)[None, :] < lengths[:, None]).astype(jnp.float32)

    logits = toynet_forward(inputs, masks, packed)
    logits = jax.block_until_ready(logits)

    ref = reference_forward(inputs, masks, params)
    assert logits.shape == (BATCH, NUM_CLASS)
    assert jnp.allclose(logits, ref, atol=1e-4, rtol=1e-4), (logits, ref)
    print("KERNEL_OK")
</pallas_src>

<mosaic_0001>
module attributes {stable_mosaic.version = 11 : i64} {
  func.func @toynet_kernel(%arg0: memref<16x1xi32, #tpu.memory_space<vmem>>, %arg1: memref<16x1xi32, #tpu.memory_space<vmem>>, %arg2: memref<16x1xf32, #tpu.memory_space<vmem>>, %arg3: memref<16x1xf32, #tpu.memory_space<vmem>>, %arg4: memref<40x384xf32, #tpu.memory_space<vmem>>, %arg5: memref<32x384xf32, #tpu.memory_space<vmem>>, %arg6: memref<1x384xf32, #tpu.memory_space<vmem>>, %arg7: memref<1x32xf32, #tpu.memory_space<vmem>>, %arg8: memref<32x128xf32, #tpu.memory_space<vmem>>, %arg9: memref<1x128xf32, #tpu.memory_space<vmem>>, %arg10: memref<2x128xf32, #tpu.memory_space<vmem>>) attributes {dimension_semantics = [], scalar_prefetch = 0 : i64, scratch_operands = 0 : i64, tpu.core_type = #tpu.core_type<tc>} {
    %0 = tpu.iota {dimensions = array<i32: 1>} : vector<16x20xi32>
    %c0 = arith.constant 0 : index
    %c0_0 = arith.constant 0 : index
    %1 = vector.load %arg0[%c0, %c0_0] : memref<16x1xi32, #tpu.memory_space<vmem>>, vector<16x1xi32>
    %2 = vector.broadcast %1 : vector<16x1xi32> to vector<16x20xi32>
    %3 = arith.cmpi eq, %2, %0 : vector<16x20xi32>
    %4 = arith.extui %3 : vector<16x20xi1> to vector<16x20xi32>
    %5 = arith.sitofp %4 : vector<16x20xi32> to vector<16x20xf32>
    %c0_1 = arith.constant 0 : index
    %c0_2 = arith.constant 0 : index
    %6 = vector.load %arg2[%c0_1, %c0_2] : memref<16x1xf32, #tpu.memory_space<vmem>>, vector<16x1xf32>
    %7 = vector.broadcast %6 : vector<16x1xf32> to vector<16x20xf32>
    %8 = arith.mulf %5, %7 : vector<16x20xf32>
    %c0_3 = arith.constant 0 : index
    %c0_4 = arith.constant 0 : index
    %9 = vector.load %arg1[%c0_3, %c0_4] : memref<16x1xi32, #tpu.memory_space<vmem>>, vector<16x1xi32>
    %10 = vector.broadcast %9 : vector<16x1xi32> to vector<16x20xi32>
    %11 = arith.cmpi eq, %10, %0 : vector<16x20xi32>
    %12 = arith.extui %11 : vector<16x20xi1> to vector<16x20xi32>
    %13 = arith.sitofp %12 : vector<16x20xi32> to vector<16x20xf32>
    %c0_5 = arith.constant 0 : index
    %c0_6 = arith.constant 0 : index
    %14 = vector.load %arg3[%c0_5, %c0_6] : memref<16x1xf32, #tpu.memory_space<vmem>>, vector<16x1xf32>
    %15 = vector.broadcast %14 : vector<16x1xf32> to vector<16x20xf32>
    %16 = arith.mulf %13, %15 : vector<16x20xf32>
    %17 = tpu.concatenate %8, %16 in 1 : vector<16x20xf32>, vector<16x20xf32> -> vector<16x40xf32>
    %c0_7 = arith.constant 0 : index
    %c0_8 = arith.constant 0 : index
    %18 = vector.load %arg4[%c0_7, %c0_8] : memref<40x384xf32, #tpu.memory_space<vmem>>, vector<40x384xf32>
    %cst = arith.constant dense<0.000000e+00> : vector<16x384xf32>
    %19 = tpu.matmul %17, %18, %cst {dimension_numbers = #tpu.dot_dimension_numbers<[1], [0], [0], [1], [0, 0, 1, 1], [], []>} : vector<16x40xf32>, vector<40x384xf32>, vector<16x384xf32> -> vector<16x384xf32>
    %c0_9 = arith.constant 0 : index
    %c0_10 = arith.constant 0 : index
    %20 = vector.load %arg6[%c0_9, %c0_10] : memref<1x384xf32, #tpu.memory_space<vmem>>, vector<1x384xf32>
    %21 = vector.broadcast %20 : vector<1x384xf32> to vector<16x384xf32>
    %22 = arith.addf %19, %21 : vector<16x384xf32>
    %c0_11 = arith.constant 0 : index
    %c0_12 = arith.constant 0 : index
    %23 = vector.load %arg5[%c0_11, %c0_12] : memref<32x384xf32, #tpu.memory_space<vmem>>, vector<32x384xf32>
    %c0_13 = arith.constant 0 : index
    %c0_14 = arith.constant 0 : index
    %24 = vector.load %arg7[%c0_13, %c0_14] : memref<1x32xf32, #tpu.memory_space<vmem>>, vector<1x32xf32>
    %25 = vector.shape_cast %24 : vector<1x32xf32> to vector<1x32xf32>
    %26 = vector.broadcast %25 : vector<1x32xf32> to vector<2x32xf32>
    %c0_15 = arith.constant 0 : index
    %c0_16 = arith.constant 0 : index
    %27 = vector.load %arg2[%c0_15, %c0_16] : memref<16x1xf32, #tpu.memory_space<vmem>>, vector<16x1xf32>
    %28 = vector.shape_cast %27 : vector<16x1xf32> to vector<16x1xf32>
    %29 = vector.broadcast %28 : vector<16x1xf32> to vector<16x16xf32>
    %c0_17 = arith.constant 0 : index
    %c0_18 = arith.constant 0 : index
    %30 = vector.load %arg3[%c0_17, %c0_18] : memref<16x1xf32, #tpu.memory_space<vmem>>, vector<16x1xf32>
    %31 = vector.shape_cast %30 : vector<16x1xf32> to vector<16x1xf32>
    %32 = vector.broadcast %31 : vector<16x1xf32> to vector<16x16xf32>
    %33 = tpu.concatenate %29, %32 in 1 : vector<16x16xf32>, vector<16x16xf32> -> vector<16x32xf32>
    %34 = vector.extract_strided_slice %22 {offsets = [0, 0], sizes = [2, 384], strides = [1, 1]} : vector<16x384xf32> to vector<2x384xf32>
    %35 = vector.extract_strided_slice %22 {offsets = [2, 0], sizes = [2, 384], strides = [1, 1]} : vector<16x384xf32> to vector<2x384xf32>
    %36 = vector.extract_strided_slice %22 {offsets = [4, 0], sizes = [2, 384], strides = [1, 1]} : vector<16x384xf32> to vector<2x384xf32>
    %37 = vector.extract_strided_slice %22 {offsets = [6, 0], sizes = [2, 384], strides = [1, 1]} : vector<16x384xf32> to vector<2x384xf32>
    %38 = vector.extract_strided_slice %22 {offsets = [8, 0], sizes = [2, 384], strides = [1, 1]} : vector<16x384xf32> to vector<2x384xf32>
    %39 = vector.extract_strided_slice %22 {offsets = [10, 0], sizes = [2, 384], strides = [1, 1]} : vector<16x384xf32> to vector<2x384xf32>
    %40 = vector.extract_strided_slice %22 {offsets = [12, 0], sizes = [2, 384], strides = [1, 1]} : vector<16x384xf32> to vector<2x384xf32>
    %41 = vector.extract_strided_slice %22 {offsets = [14, 0], sizes = [2, 384], strides = [1, 1]} : vector<16x384xf32> to vector<2x384xf32>
    %42 = vector.extract_strided_slice %33 {offsets = [0, 0], sizes = [2, 32], strides = [1, 1]} : vector<16x32xf32> to vector<2x32xf32>
    %cst_19 = arith.constant 0.000000e+00 : f32
    %43 = vector.broadcast %cst_19 : f32 to vector<2x32xf32>
    %44 = arith.cmpf ogt, %42, %43 : vector<2x32xf32>
    %45 = vector.extract_strided_slice %33 {offsets = [2, 0], sizes = [2, 32], strides = [1, 1]} : vector<16x32xf32> to vector<2x32xf32>
    %cst_20 = arith.constant 0.000000e+00 : f32
    %46 = vector.broadcast %cst_20 : f32 to vector<2x32xf32>
    %47 = arith.cmpf ogt, %45, %46 : vector<2x32xf32>
    %48 = vector.extract_strided_slice %33 {offsets = [4, 0], sizes = [2, 32], strides = [1, 1]} : vector<16x32xf32> to vector<2x32xf32>
    %cst_21 = arith.constant 0.000000e+00 : f32
    %49 = vector.broadcast %cst_21 : f32 to vector<2x32xf32>
    %50 = arith.cmpf ogt, %48, %49 : vector<2x32xf32>
    %51 = vector.extract_strided_slice %33 {offsets = [6, 0], sizes = [2, 32], strides = [1, 1]} : vector<16x32xf32> to vector<2x32xf32>
    %cst_22 = arith.constant 0.000000e+00 : f32
    %52 = vector.broadcast %cst_22 : f32 to vector<2x32xf32>
    %53 = arith.cmpf ogt, %51, %52 : vector<2x32xf32>
    %54 = vector.extract_strided_slice %33 {offsets = [8, 0], sizes = [2, 32], strides = [1, 1]} : vector<16x32xf32> to vector<2x32xf32>
    %cst_23 = arith.constant 0.000000e+00 : f32
    %55 = vector.broadcast %cst_23 : f32 to vector<2x32xf32>
    %56 = arith.cmpf ogt, %54, %55 : vector<2x32xf32>
    %57 = vector.extract_strided_slice %33 {offsets = [10, 0], sizes = [2, 32], strides = [1, 1]} : vector<16x32xf32> to vector<2x32xf32>
    %cst_24 = arith.constant 0.000000e+00 : f32
    %58 = vector.broadcast %cst_24 : f32 to vector<2x32xf32>
    %59 = arith.cmpf ogt, %57, %58 : vector<2x32xf32>
    %60 = vector.extract_strided_slice %33 {offsets = [12, 0], sizes = [2, 32], strides = [1, 1]} : vector<16x32xf32> to vector<2x32xf32>
    %cst_25 = arith.constant 0.000000e+00 : f32
    %61 = vector.broadcast %cst_25 : f32 to vector<2x32xf32>
    %62 = arith.cmpf ogt, %60, %61 : vector<2x32xf32>
    %63 = vector.extract_strided_slice %33 {offsets = [14, 0], sizes = [2, 32], strides = [1, 1]} : vector<16x32xf32> to vector<2x32xf32>
    %cst_26 = arith.constant 0.000000e+00 : f32
    %64 = vector.broadcast %cst_26 : f32 to vector<2x32xf32>
    %65 = arith.cmpf ogt, %63, %64 : vector<2x32xf32>
    %cst_27 = arith.constant 0.000000e+00 : f32
    %66 = vector.broadcast %cst_27 : f32 to vector<2x32xf32>
    %cst_28 = arith.constant -1.000000e+06 : f32
    %67 = vector.broadcast %cst_28 : f32 to vector<2x32xf32>
    %cst_29 = arith.constant dense<0.000000e+00> : vector<2x384xf32>
    %68 = tpu.matmul %66, %23, %cst_29 {dimension_numbers = #tpu.dot_dimension_numbers<[1], [0], [0], [1], [0, 0, 1, 1], [], []>} : vector<2x32xf32>, vector<32x384xf32>, vector<2x384xf32> -> vector<2x384xf32>
    %69 = vector.extract_strided_slice %34 {offsets = [0, 0], sizes = [2, 256], strides = [1, 1]} : vector<2x384xf32> to vector<2x256xf32>
    %70 = vector.extract_strided_slice %68 {offsets = [0, 0], sizes = [2, 256], strides = [1, 1]} : vector<2x384xf32> to vector<2x256xf32>
    %71 = arith.addf %69, %70 : vector<2x256xf32>
    %72 = arith.negf %71 : vector<2x256xf32>
    %73 = math.exp %72 : vector<2x256xf32>
    %cst_30 = arith.constant 1.000000e+00 : f32
    %74 = vector.broadcast %cst_30 : f32 to vector<2x256xf32>
    %75 = arith.addf %74, %73 : vector<2x256xf32>
    %76 = arith.divf %74, %75 : vector<2x256xf32>
    %77 = vector.extract_strided_slice %76 {offsets = [0, 0], sizes = [2, 32], strides = [1, 1]} : vector<2x256xf32> to vector<2x32xf32>
    %78 = vector.extract_strided_slice %76 {offsets = [0, 128], sizes = [2, 32], strides = [1, 1]} : vector<2x256xf32> to vector<2x32xf32>
    %79 = vector.extract_strided_slice %34 {offsets = [0, 256], sizes = [2, 32], strides = [1, 1]} : vector<2x384xf32> to vector<2x32xf32>
    %80 = vector.extract_strided_slice %68 {offsets = [0, 256], sizes = [2, 32], strides = [1, 1]} : vector<2x384xf32> to vector<2x32xf32>
    %81 = arith.addf %80, %26 : vector<2x32xf32>
    %82 = arith.mulf %77, %81 : vector<2x32xf32>
    %83 = arith.addf %79, %82 : vector<2x32xf32>
    %84 = math.tanh %83 : vector<2x32xf32>
    %cst_31 = arith.constant 1.000000e+00 : f32
    %85 = vector.broadcast %cst_31 : f32 to vector<2x32xf32>
    %86 = arith.subf %85, %78 : vector<2x32xf32>
    %87 = arith.mulf %86, %84 : vector<2x32xf32>
    %88 = arith.mulf %78, %66 : vector<2x32xf32>
    %89 = arith.addf %87, %88 : vector<2x32xf32>
    %cst_32 = arith.constant -1.000000e+06 : f32
    %90 = vector.broadcast %cst_32 : f32 to vector<2x32xf32>
    %91 = arith.select %44, %89, %90 : vector<2x32xi1>, vector<2x32xf32>
    %92 = arith.maximumf %67, %91 : vector<2x32xf32>
    %cst_33 = arith.constant dense<0.000000e+00> : vector<2x384xf32>
    %93 = tpu.matmul %89, %23, %cst_33 {dimension_numbers = #tpu.dot_dimension_numbers<[1], [0], [0], [1], [0, 0, 1, 1], [], []>} : vector<2x32xf32>, vector<32x384xf32>, vector<2x384xf32> -> vector<2x384xf32>
    %94 = vector.extract_strided_slice %35 {offsets = [0, 0], sizes = [2, 256], strides = [1, 1]} : vector<2x384xf32> to vector<2x256xf32>
    %95 = vector.extract_strided_slice %93 {offsets = [0, 0], sizes = [2, 256], strides = [1, 1]} : vector<2x384xf32> to vector<2x256xf32>
    %96 = arith.addf %94, %95 : vector<2x256xf32>
    %97 = arith.negf %96 : vector<2x256xf32>
    %98 = math.exp %97 : vector<2x256xf32>
    %cst_34 = arith.constant 1.000000e+00 : f32
    %99 = vector.broadcast %cst_34 : f32 to vector<2x256xf32>
    %100 = arith.addf %99, %98 : vector<2x256xf32>
    %101 = arith.divf %99, %100 : vector<2x256xf32>
    %102 = vector.extract_strided_slice %101 {offsets = [0, 0], sizes = [2, 32], strides = [1, 1]} : vector<2x256xf32> to vector<2x32xf32>
    %103 = vector.extract_strided_slice %101 {offsets = [0, 128], sizes = [2, 32], strides = [1, 1]} : vector<2x256xf32> to vector<2x32xf32>
    %104 = vector.extract_strided_slice %35 {offsets = [0, 256], sizes = [2, 32], strides = [1, 1]} : vector<2x384xf32> to vector<2x32xf32>
    %105 = vector.extract_strided_slice %93 {offsets = [0, 256], sizes = [2, 32], strides = [1, 1]} : vector<2x384xf32> to vector<2x32xf32>
    %106 = arith.addf %105, %26 : vector<2x32xf32>
    %107 = arith.mulf %102, %106 : vector<2x32xf32>
    %108 = arith.addf %104, %107 : vector<2x32xf32>
    %109 = math.tanh %108 : vector<2x32xf32>
    %cst_35 = arith.constant 1.000000e+00 : f32
    %110 = vector.broadcast %cst_35 : f32 to vector<2x32xf32>
    %111 = arith.subf %110, %103 : vector<2x32xf32>
    %112 = arith.mulf %111, %109 : vector<2x32xf32>
    %113 = arith.mulf %103, %89 : vector<2x32xf32>
    %114 = arith.addf %112, %113 : vector<2x32xf32>
    %cst_36 = arith.constant -1.000000e+06 : f32
    %115 = vector.broadcast %cst_36 : f32 to vector<2x32xf32>
    %116 = arith.select %47, %114, %115 : vector<2x32xi1>, vector<2x32xf32>
    %117 = arith.maximumf %92, %116 : vector<2x32xf32>
    %cst_37 = arith.constant dense<0.000000e+00> : vector<2x384xf32>
    %118 = tpu.matmul %114, %23, %cst_37 {dimension_numbers = #tpu.dot_dimension_numbers<[1], [0], [0], [1], [0, 0, 1, 1], [], []>} : vector<2x32xf32>, vector<32x384xf32>, vector<2x384xf32> -> vector<2x384xf32>
    %119 = vector.extract_strided_slice %36 {offsets = [0, 0], sizes = [2, 256], strides = [1, 1]} : vector<2x384xf32> to vector<2x256xf32>
    %120 = vector.extract_strided_slice %118 {offsets = [0, 0], sizes = [2, 256], strides = [1, 1]} : vector<2x384xf32> to vector<2x256xf32>
    %121 = arith.addf %119, %120 : vector<2x256xf32>
    %122 = arith.negf %121 : vector<2x256xf32>
    %123 = math.exp %122 : vector<2x256xf32>
    %cst_38 = arith.constant 1.000000e+00 : f32
    %124 = vector.broadcast %cst_38 : f32 to vector<2x256xf32>
    %125 = arith.addf %124, %123 : vector<2x256xf32>
    %126 = arith.divf %124, %125 : vector<2x256xf32>
    %127 = vector.extract_strided_slice %126 {offsets = [0, 0], sizes = [2, 32], strides = [1, 1]} : vector<2x256xf32> to vector<2x32xf32>
    %128 = vector.extract_strided_slice %126 {offsets = [0, 128], sizes = [2, 32], strides = [1, 1]} : vector<2x256xf32> to vector<2x32xf32>
    %129 = vector.extract_strided_slice %36 {offsets = [0, 256], sizes = [2, 32], strides = [1, 1]} : vector<2x384xf32> to vector<2x32xf32>
    %130 = vector.extract_strided_slice %118 {offsets = [0, 256], sizes = [2, 32], strides = [1, 1]} : vector<2x384xf32> to vector<2x32xf32>
    %131 = arith.addf %130, %26 : vector<2x32xf32>
    %132 = arith.mulf %127, %131 : vector<2x32xf32>
    %133 = arith.addf %129, %132 : vector<2x32xf32>
    %134 = math.tanh %133 : vector<2x32xf32>
    %cst_39 = arith.constant 1.000000e+00 : f32
    %135 = vector.broadcast %cst_39 : f32 to vector<2x32xf32>
    %136 = arith.subf %135, %128 : vector<2x32xf32>
    %137 = arith.mulf %136, %134 : vector<2x32xf32>
    %138 = arith.mulf %128, %114 : vector<2x32xf32>
    %139 = arith.addf %137, %138 : vector<2x32xf32>
    %cst_40 = arith.constant -1.000000e+06 : f32
    %140 = vector.broadcast %cst_40 : f32 to vector<2x32xf32>
    %141 = arith.select %50, %139, %140 : vector<2x32xi1>, vector<2x32xf32>
    %142 = arith.maximumf %117, %141 : vector<2x32xf32>
    %cst_41 = arith.constant dense<0.000000e+00> : vector<2x384xf32>
    %143 = tpu.matmul %139, %23, %cst_41 {dimension_numbers = #tpu.dot_dimension_numbers<[1], [0], [0], [1], [0, 0, 1, 1], [], []>} : vector<2x32xf32>, vector<32x384xf32>, vector<2x384xf32> -> vector<2x384xf32>
    %144 = vector.extract_strided_slice %37 {offsets = [0, 0], sizes = [2, 256], strides = [1, 1]} : vector<2x384xf32> to vector<2x256xf32>
    %145 = vector.extract_strided_slice %143 {offsets = [0, 0], sizes = [2, 256], strides = [1, 1]} : vector<2x384xf32> to vector<2x256xf32>
    %146 = arith.addf %144, %145 : vector<2x256xf32>
    %147 = arith.negf %146 : vector<2x256xf32>
    %148 = math.exp %147 : vector<2x256xf32>
    %cst_42 = arith.constant 1.000000e+00 : f32
    %149 = vector.broadcast %cst_42 : f32 to vector<2x256xf32>
    %150 = arith.addf %149, %148 : vector<2x256xf32>
    %151 = arith.divf %149, %150 : vector<2x256xf32>
    %152 = vector.extract_strided_slice %151 {offsets = [0, 0], sizes = [2, 32], strides = [1, 1]} : vector<2x256xf32> to vector<2x32xf32>
    %153 = vector.extract_strided_slice %151 {offsets = [0, 128], sizes = [2, 32], strides = [1, 1]} : vector<2x256xf32> to vector<2x32xf32>
    %154 = vector.extract_strided_slice %37 {offsets = [0, 256], sizes = [2, 32], strides = [1, 1]} : vector<2x384xf32> to vector<2x32xf32>
    %155 = vector.extract_strided_slice %143 {offsets = [0, 256], sizes = [2, 32], strides = [1, 1]} : vector<2x384xf32> to vector<2x32xf32>
    %156 = arith.addf %155, %26 : vector<2x32xf32>
    %157 = arith.mulf %152, %156 : vector<2x32xf32>
    %158 = arith.addf %154, %157 : vector<2x32xf32>
    %159 = math.tanh %158 : vector<2x32xf32>
    %cst_43 = arith.constant 1.000000e+00 : f32
    %160 = vector.broadcast %cst_43 : f32 to vector<2x32xf32>
    %161 = arith.subf %160, %153 : vector<2x32xf32>
    %162 = arith.mulf %161, %159 : vector<2x32xf32>
    %163 = arith.mulf %153, %139 : vector<2x32xf32>
    %164 = arith.addf %162, %163 : vector<2x32xf32>
    %cst_44 = arith.constant -1.000000e+06 : f32
    %165 = vector.broadcast %cst_44 : f32 to vector<2x32xf32>
    %166 = arith.select %53, %164, %165 : vector<2x32xi1>, vector<2x32xf32>
    %167 = arith.maximumf %142, %166 : vector<2x32xf32>
    %cst_45 = arith.constant dense<0.000000e+00> : vector<2x384xf32>
    %168 = tpu.matmul %164, %23, %cst_45 {dimension_numbers = #tpu.dot_dimension_numbers<[1], [0], [0], [1], [0, 0, 1, 1], [], []>} : vector<2x32xf32>, vector<32x384xf32>, vector<2x384xf32> -> vector<2x384xf32>
    %169 = vector.extract_strided_slice %38 {offsets = [0, 0], sizes = [2, 256], strides = [1, 1]} : vector<2x384xf32> to vector<2x256xf32>
    %170 = vector.extract_strided_slice %168 {offsets = [0, 0], sizes = [2, 256], strides = [1, 1]} : vector<2x384xf32> to vector<2x256xf32>
    %171 = arith.addf %169, %170 : vector<2x256xf32>
    %172 = arith.negf %171 : vector<2x256xf32>
    %173 = math.exp %172 : vector<2x256xf32>
    %cst_46 = arith.constant 1.000000e+00 : f32
    %174 = vector.broadcast %cst_46 : f32 to vector<2x256xf32>
    %175 = arith.addf %174, %173 : vector<2x256xf32>
    %176 = arith.divf %174, %175 : vector<2x256xf32>
    %177 = vector.extract_strided_slice %176 {offsets = [0, 0], sizes = [2, 32], strides = [1, 1]} : vector<2x256xf32> to vector<2x32xf32>
    %178 = vector.extract_strided_slice %176 {offsets = [0, 128], sizes = [2, 32], strides = [1, 1]} : vector<2x256xf32> to vector<2x32xf32>
    %179 = vector.extract_strided_slice %38 {offsets = [0, 256], sizes = [2, 32], strides = [1, 1]} : vector<2x384xf32> to vector<2x32xf32>
    %180 = vector.extract_strided_slice %168 {offsets = [0, 256], sizes = [2, 32], strides = [1, 1]} : vector<2x384xf32> to vector<2x32xf32>
    %181 = arith.addf %180, %26 : vector<2x32xf32>
    %182 = arith.mulf %177, %181 : vector<2x32xf32>
    %183 = arith.addf %179, %182 : vector<2x32xf32>
    %184 = math.tanh %183 : vector<2x32xf32>
    %cst_47 = arith.constant 1.000000e+00 : f32
    %185 = vector.broadcast %cst_47 : f32 to vector<2x32xf32>
    %186 = arith.subf %185, %178 : vector<2x32xf32>
    %187 = arith.mulf %186, %184 : vector<2x32xf32>
    %188 = arith.mulf %178, %164 : vector<2x32xf32>
    %189 = arith.addf %187, %188 : vector<2x32xf32>
    %cst_48 = arith.constant -1.000000e+06 : f32
    %190 = vector.broadcast %cst_48 : f32 to vector<2x32xf32>
    %191 = arith.select %56, %189, %190 : vector<2x32xi1>, vector<2x32xf32>
    %192 = arith.maximumf %167, %191 : vector<2x32xf32>
    %cst_49 = arith.constant dense<0.000000e+00> : vector<2x384xf32>
    %193 = tpu.matmul %189, %23, %cst_49 {dimension_numbers = #tpu.dot_dimension_numbers<[1], [0], [0], [1], [0, 0, 1, 1], [], []>} : vector<2x32xf32>, vector<32x384xf32>, vector<2x384xf32> -> vector<2x384xf32>
    %194 = vector.extract_strided_slice %39 {offsets = [0, 0], sizes = [2, 256], strides = [1, 1]} : vector<2x384xf32> to vector<2x256xf32>
    %195 = vector.extract_strided_slice %193 {offsets = [0, 0], sizes = [2, 256], strides = [1, 1]} : vector<2x384xf32> to vector<2x256xf32>
    %196 = arith.addf %194, %195 : vector<2x256xf32>
    %197 = arith.negf %196 : vector<2x256xf32>
    %198 = math.exp %197 : vector<2x256xf32>
    %cst_50 = arith.constant 1.000000e+00 : f32
    %199 = vector.broadcast %cst_50 : f32 to vector<2x256xf32>
    %200 = arith.addf %199, %198 : vector<2x256xf32>
    %201 = arith.divf %199, %200 : vector<2x256xf32>
    %202 = vector.extract_strided_slice %201 {offsets = [0, 0], sizes = [2, 32], strides = [1, 1]} : vector<2x256xf32> to vector<2x32xf32>
    %203 = vector.extract_strided_slice %201 {offsets = [0, 128], sizes = [2, 32], strides = [1, 1]} : vector<2x256xf32> to vector<2x32xf32>
    %204 = vector.extract_strided_slice %39 {offsets = [0, 256], sizes = [2, 32], strides = [1, 1]} : vector<2x384xf32> to vector<2x32xf32>
    %205 = vector.extract_strided_slice %193 {offsets = [0, 256], sizes = [2, 32], strides = [1, 1]} : vector<2x384xf32> to vector<2x32xf32>
    %206 = arith.addf %205, %26 : vector<2x32xf32>
    %207 = arith.mulf %202, %206 : vector<2x32xf32>
    %208 = arith.addf %204, %207 : vector<2x32xf32>
    %209 = math.tanh %208 : vector<2x32xf32>
    %cst_51 = arith.constant 1.000000e+00 : f32
    %210 = vector.broadcast %cst_51 : f32 to vector<2x32xf32>
    %211 = arith.subf %210, %203 : vector<2x32xf32>
    %212 = arith.mulf %211, %209 : vector<2x32xf32>
    %213 = arith.mulf %203, %189 : vector<2x32xf32>
    %214 = arith.addf %212, %213 : vector<2x32xf32>
    %cst_52 = arith.constant -1.000000e+06 : f32
    %215 = vector.broadcast %cst_52 : f32 to vector<2x32xf32>
    %216 = arith.select %59, %214, %215 : vector<2x32xi1>, vector<2x32xf32>
    %217 = arith.maximumf %192, %216 : vector<2x32xf32>
    %cst_53 = arith.constant dense<0.000000e+00> : vector<2x384xf32>
    %218 = tpu.matmul %214, %23, %cst_53 {dimension_numbers = #tpu.dot_dimension_numbers<[1], [0], [0], [1], [0, 0, 1, 1], [], []>} : vector<2x32xf32>, vector<32x384xf32>, vector<2x384xf32> -> vector<2x384xf32>
    %219 = vector.extract_strided_slice %40 {offsets = [0, 0], sizes = [2, 256], strides = [1, 1]} : vector<2x384xf32> to vector<2x256xf32>
    %220 = vector.extract_strided_slice %218 {offsets = [0, 0], sizes = [2, 256], strides = [1, 1]} : vector<2x384xf32> to vector<2x256xf32>
    %221 = arith.addf %219, %220 : vector<2x256xf32>
    %222 = arith.negf %221 : vector<2x256xf32>
    %223 = math.exp %222 : vector<2x256xf32>
    %cst_54 = arith.constant 1.000000e+00 : f32
    %224 = vector.broadcast %cst_54 : f32 to vector<2x256xf32>
    %225 = arith.addf %224, %223 : vector<2x256xf32>
    %226 = arith.divf %224, %225 : vector<2x256xf32>
    %227 = vector.extract_strided_slice %226 {offsets = [0, 0], sizes = [2, 32], strides = [1, 1]} : vector<2x256xf32> to vector<2x32xf32>
    %228 = vector.extract_strided_slice %226 {offsets = [0, 128], sizes = [2, 32], strides = [1, 1]} : vector<2x256xf32> to vector<2x32xf32>
    %229 = vector.extract_strided_slice %40 {offsets = [0, 256], sizes = [2, 32], strides = [1, 1]} : vector<2x384xf32> to vector<2x32xf32>
    %230 = vector.extract_strided_slice %218 {offsets = [0, 256], sizes = [2, 32], strides = [1, 1]} : vector<2x384xf32> to vector<2x32xf32>
    %231 = arith.addf %230, %26 : vector<2x32xf32>
    %232 = arith.mulf %227, %231 : vector<2x32xf32>
    %233 = arith.addf %229, %232 : vector<2x32xf32>
    %234 = math.tanh %233 : vector<2x32xf32>
    %cst_55 = arith.constant 1.000000e+00 : f32
    %235 = vector.broadcast %cst_55 : f32 to vector<2x32xf32>
    %236 = arith.subf %235, %228 : vector<2x32xf32>
    %237 = arith.mulf %236, %234 : vector<2x32xf32>
    %238 = arith.mulf %228, %214 : vector<2x32xf32>
    %239 = arith.addf %237, %238 : vector<2x32xf32>
    %cst_56 = arith.constant -1.000000e+06 : f32
    %240 = vector.broadcast %cst_56 : f32 to vector<2x32xf32>
    %241 = arith.select %62, %239, %240 : vector<2x32xi1>, vector<2x32xf32>
    %242 = arith.maximumf %217, %241 : vector<2x32xf32>
    %cst_57 = arith.constant dense<0.000000e+00> : vector<2x384xf32>
    %243 = tpu.matmul %239, %23, %cst_57 {dimension_numbers = #tpu.dot_dimension_numbers<[1], [0], [0], [1], [0, 0, 1, 1], [], []>} : vector<2x32xf32>, vector<32x384xf32>, vector<2x384xf32> -> vector<2x384xf32>
    %244 = vector.extract_strided_slice %41 {offsets = [0, 0], sizes = [2, 256], strides = [1, 1]} : vector<2x384xf32> to vector<2x256xf32>
    %245 = vector.extract_strided_slice %243 {offsets = [0, 0], sizes = [2, 256], strides = [1, 1]} : vector<2x384xf32> to vector<2x256xf32>
    %246 = arith.addf %244, %245 : vector<2x256xf32>
    %247 = arith.negf %246 : vector<2x256xf32>
    %248 = math.exp %247 : vector<2x256xf32>
    %cst_58 = arith.constant 1.000000e+00 : f32
    %249 = vector.broadcast %cst_58 : f32 to vector<2x256xf32>
    %250 = arith.addf %249, %248 : vector<2x256xf32>
    %251 = arith.divf %249, %250 : vector<2x256xf32>
    %252 = vector.extract_strided_slice %251 {offsets = [0, 0], sizes = [2, 32], strides = [1, 1]} : vector<2x256xf32> to vector<2x32xf32>
    %253 = vector.extract_strided_slice %251 {offsets = [0, 128], sizes = [2, 32], strides = [1, 1]} : vector<2x256xf32> to vector<2x32xf32>
    %254 = vector.extract_strided_slice %41 {offsets = [0, 256], sizes = [2, 32], strides = [1, 1]} : vector<2x384xf32> to vector<2x32xf32>
    %255 = vector.extract_strided_slice %243 {offsets = [0, 256], sizes = [2, 32], strides = [1, 1]} : vector<2x384xf32> to vector<2x32xf32>
    %256 = arith.addf %255, %26 : vector<2x32xf32>
    %257 = arith.mulf %252, %256 : vector<2x32xf32>
    %258 = arith.addf %254, %257 : vector<2x32xf32>
    %259 = math.tanh %258 : vector<2x32xf32>
    %cst_59 = arith.constant 1.000000e+00 : f32
    %260 = vector.broadcast %cst_59 : f32 to vector<2x32xf32>
    %261 = arith.subf %260, %253 : vector<2x32xf32>
    %262 = arith.mulf %261, %259 : vector<2x32xf32>
    %263 = arith.mulf %253, %239 : vector<2x32xf32>
    %264 = arith.addf %262, %263 : vector<2x32xf32>
    %cst_60 = arith.constant -1.000000e+06 : f32
    %265 = vector.broadcast %cst_60 : f32 to vector<2x32xf32>
    %266 = arith.select %65, %264, %265 : vector<2x32xi1>, vector<2x32xf32>
    %267 = arith.maximumf %242, %266 : vector<2x32xf32>
    %c0_61 = arith.constant 0 : index
    %c0_62 = arith.constant 0 : index
    %268 = vector.load %arg8[%c0_61, %c0_62] : memref<32x128xf32, #tpu.memory_space<vmem>>, vector<32x128xf32>
    %cst_63 = arith.constant dense<0.000000e+00> : vector<2x128xf32>
    %269 = tpu.matmul %267, %268, %cst_63 {dimension_numbers = #tpu.dot_dimension_numbers<[1], [0], [0], [1], [0, 0, 1, 1], [], []>} : vector<2x32xf32>, vector<32x128xf32>, vector<2x128xf32> -> vector<2x128xf32>
    %c0_64 = arith.constant 0 : index
    %c0_65 = arith.constant 0 : index
    %270 = vector.load %arg9[%c0_64, %c0_65] : memref<1x128xf32, #tpu.memory_space<vmem>>, vector<1x128xf32>
    %271 = vector.broadcast %270 : vector<1x128xf32> to vector<2x128xf32>
    %272 = arith.addf %269, %271 : vector<2x128xf32>
    %c0_66 = arith.constant 0 : index
    %c0_67 = arith.constant 0 : index
    %273 = vector.load %arg10[%c0_66, %c0_67] : memref<2x128xf32, #tpu.memory_space<vmem>>, vector<2x128xf32>
    tpu.vector_store %arg10[%c0_66, %c0_67], %272 {strides = array<i32>} : memref<2x128xf32, #tpu.memory_space<vmem>>, vector<2x128xf32>,
    return
  }
}

</mosaic_0001>

<bundles_post_ra>
// kernel: toynet_forward.1
= control target key start
LH: loop header
LB: loop body
LE: loop exit
PB: predicated region body
PF: predicated region fallthrough
CT: control target
= control target key end

     0   :  { %15 = vsyncpa [#allocation3], 0  ;;  %s1974_s0 = inlined_call_operand.vmem [shape: s32[16,1], index: 0, kind: input, shape index: {}]   ;;  %s1975_s1 = inlined_call_operand.vmem [shape: s32[16,1], index: 1, kind: input, shape index: {}]   ;;  %s1976_s2 = inlined_call_operand.vmem [shape: f32[16,1], index: 2, kind: input, shape index: {}]   ;;  %s1977_s3 = inlined_call_operand.vmem [shape: f32[16,1], index: 3, kind: input, shape index: {}]   ;;  %s1978_s4 = inlined_call_operand.hbm [shape: f32[40,384], index: 4, kind: input, shape index: {}]   ;;  %s1979_s5 = inlined_call_operand.hbm [shape: f32[32,384], index: 5, kind: input, shape index: {}]   ;;  %s1980_s6 = inlined_call_operand.vmem [shape: f32[1,384], index: 6, kind: input, shape index: {}]   ;;  %s1981_s7 = inlined_call_operand.vmem [shape: f32[1,32], index: 7, kind: input, shape index: {}]   ;;  %s1982_s8 = inlined_call_operand.vmem [shape: f32[32,128], index: 8, kind: input, shape index: {}]   ;;  %s1983_s9 = inlined_call_operand.vmem [shape: f32[1,128], index: 9, kind: input, shape index: {}]   ;;  %s1984_s10 = inlined_call_operand.hbm [shape: f32[2,128], index: 10, kind: output, shape index: {}]  }
   0x1   :  { %16 = vsyncpa [#allocation6], 0 }
   0x2   :  { %17 = vsyncpa [#allocation4], 0  ;;  %s30_s15 = sshll.u32 %s1978_s4, 4  ;;  %s1521_s16 = smov [#allocation2]   ;;  %s31_s15 = int_to_ptr.hbm [resolvable:$true] %s30_s15 }
   0x3   :  { %s32_s17 = sshll.u32 %s1521_s16, 4  ;;  %s43_s20 = sshll.u32 %s1979_s5, 4  ;;  %s33_s17 = int_to_ptr.vmem [resolvable:$true] %s32_s17  ;;  %s44_s20 = int_to_ptr.hbm [resolvable:$true] %s43_s20 }
   0x4   :  { %s1522_s21 = smov 384   ;;  %s1523_s22 = smov 24  }
   0x5   :  { %38 = dma.hbm_to_vmem [thread:$0]  %s31_s15, 1920, %s33_s17, [#allocation3], %s1522_s21, %s1522_s21, %s1523_s22  }
   0x6   :  { %s1524_s23 = smov [#allocation5]  }
   0x7   :  { %s45_s24 = sshll.u32 %s1524_s23, 4  ;;  %s46_s24 = int_to_ptr.vmem [resolvable:$true] %s45_s24 }
   0x8   :  { %51 = dma.hbm_to_vmem [thread:$0]  %s44_s20, 1536, %s46_s24, [#allocation6], %s1522_s21, %s1522_s21, %s1523_s22  }
   0x9   :  { %1515 = dma.done.wait [#allocation3], 1920  }
   0xa   :  { %1516 = vsyncadd [#allocation3], 4294965376 }
   0xb   :  { %1517 = dma.done.wait [#allocation6], 1536  }
   0xc   :  { %1518 = vsyncadd [#allocation6], 4294965760  ;;  %v1525_v0 = vmov 0   ;;  %v98_v1 = vld [vmem:[%s1975_s1] sm:$0xff]  ;;  %v113_v5 = vld [vmem:[%s1977_s3 + $0x8] sm:$0xff]  ;;  %v68_v10 = vlaneseq  ;;  %v1526_v28 = vmov 0.0  }
   0xd   :  { %1359 = vset.pattern.permute.xlu1 %v1525_v0  ;;  %1358 = vset.pattern.permute.xlu0 %v1525_v0  ;;  %v70_v2 = vld [vmem:[%s1974_s0] sm:$0xff]  ;;  %v71_v6 = vld [vmem:[%s1974_s0 + $0x8] sm:$0xff]  ;;  %v1613_v11 = vld [vmem:[#allocation5 + $0x18] sm:$0xff]  ;;  %vm252_vm1 = vcmask 130048   ;;  %s1527_s0 = smov 20   ;;  %vm134_vm3 = vcmask 162816  }
   0xe   :  { %1360 = vset.pattern.permute.xlu2 %v1525_v0  ;;  %101 = vperm.xlu0 %1358, %v98_v1   ;;  %v112_v3 = vld [vmem:[%s1977_s3] sm:$0xff]  ;;  %v1610_v8 = vld [vmem:[#allocation5 + $0x30] sm:$0xff]  ;;  %v151_v13 = vld [vmem:[#allocation2 + $0x70] sm:$0xff]  ;;  %v1621_v23 = vand.u32 127, %v68_v10  ;;  %vm160_vm4 = vcmask 326656   ;;  %vm257_vm15 = vcmask 261120  }
   0xf   :  { %73 = vperm.xlu1 %1359, %v70_v2   ;;  %v84_v4 = vld [vmem:[%s1976_s2] sm:$0xff]  ;;  %v150_v12 = vld [vmem:[#allocation2 + $0x68] sm:$0xff]  ;;  %v147_v15 = vld [vmem:[#allocation2 + $0x50] sm:$0xff]  ;;  %224 = vmatpush.msra.mxu2 %v151_v13  ;;  %s1528_s5 = smov [#allocation7]   ;;  %s1291_s29 = sshll.u32 %s1984_s10, 4  ;;  %s1292_s29 = int_to_ptr.hbm [resolvable:$true] %s1291_s29 }
  0x10   :  { %v1608_v7 = vld [vmem:[#allocation5 + $0x48] sm:$0xff]  ;;  %201 = vmatpush.msra.mxu1 %v150_v12  ;;  %v146_v14 = vld [vmem:[#allocation2 + $0x48] sm:$0xff]  ;;  %v148_v16 = vld [vmem:[#allocation2 + $0x58] sm:$0xff]  ;;  %s1289_s26 = sshll.u32 %s1528_s5, 4  ;;  %s1290_s26 = int_to_ptr.vmem [resolvable:$true] %s1289_s26 }
  0x11   :  { %273 = vmatpush.msra.mxu3 %v1608_v7  ;;  %v149_v9 = vld [vmem:[#allocation2 + $0x60] sm:$0xff]  ;;  %v1616_v17 = vld [vmem:[#allocation5] sm:$0xff]  ;;  %v143_v18 = vld [vmem:[#allocation2 + $0x30] sm:$0xff]  ;;  %225 = vmatpush.msra.mxu2 %v148_v16 }
  0x12   :  { %178 = vmatpush.msra.mxu0 %v149_v9  ;;  %v144_v19 = vld [vmem:[#allocation2 + $0x38] sm:$0xff]  ;;  %202 = vmatpush.msra.mxu1 %v147_v15  ;;  %v145_v22 = vld [vmem:[#allocation2 + $0x40] sm:$0xff]  ;;  %v1623_v24 = vld [vmem:[#allocation5 + $0x50] sm:$0xff] }
  0x13   :  { %274 = vmatpush.msra.mxu3 %v1610_v8  ;;  %v140_v25 = vld [vmem:[#allocation2 + $0x18] sm:$0xff]  ;;  %v141_v26 = vld [vmem:[#allocation2 + $0x20] sm:$0xff]  ;;  %v142_v27 = vld [vmem:[#allocation2 + $0x28] sm:$0xff]  ;;  %226 = vmatpush.msra.mxu2 %v145_v22 }
  0x14   :  { %179 = vmatpush.msra.mxu0 %v146_v14  ;;  %203 = vmatpush.msra.mxu1 %v144_v19  ;;  %v1627_v29 = vld [vmem:[#allocation5 + $0x38] sm:$0xff]  ;;  %v1631_v30 = vld [vmem:[#allocation5 + $0x20] sm:$0xff]  ;;  %v1634_v31 = vld [vmem:[#allocation5 + $0x8] sm:$0xff] }
  0x15   :  { %275 = vmatpush.msra.mxu3 %v1613_v11  ;;  %227 = vmatpush.msra.mxu2 %v142_v27  ;;  %v99_v37 = vld [vmem:[%s1975_s1 + $0x8] sm:$0xff]  ;;  %v137_v39 = vld [vmem:[#allocation2] sm:$0xff]  ;;  %v139_v41 = vld [vmem:[#allocation2 + $0x10] sm:$0xff] }
  0x16   :  { %116 = vperm.xlu0 %1358, %v112_v3   ;;  %180 = vmatpush.msra.mxu0 %v143_v18  ;;  %v85_v38 = vld [vmem:[%s1976_s2 + $0x8] sm:$0xff]  ;;  %v1658_v42 = vld [vmem:[#allocation5 + $0x58] sm:$0xff]  ;;  %v1660_v43 = vld [vmem:[#allocation5 + $0x40] sm:$0xff] }
  0x17   :  { %88 = vperm.xlu1 %1359, %v84_v4   ;;  %276 = vmatpush.msra.mxu3 %v1616_v17  ;;  %v138_v40 = vld [vmem:[#allocation2 + $0x8] sm:$0xff]  ;;  %v1664_v44 = vld [vmem:[#allocation5 + $0x28] sm:$0xff] }
  0x18   :  { %277 = vmatmul.f32.vlgmr.msra.gmra.mxu3 %v1526_v28  ;;  %181 = vmatpush.msra.mxu0 %v140_v25  ;;  %v1668_v45 = vld [vmem:[#allocation5 + $0x10] sm:$0xff]  ;;  %v1711_v56 = vld [vmem:[%s1980_s6] sm:$0x7] }
  0x19   :  { %293 = vmatpush.msrb.mxu3 %v1623_v24  ;;  %204 = vmatpush.msra.mxu1 %v141_v26  ;;  %v154_v58 = vperm.slane %v1711_v56, 0  ;;  %v155_v60 = vperm.slane %v1711_v56, 1 }
  0x1a   :  { %182 = vmatpush.msra.mxu0 %v137_v39  ;;  %228 = vmatpush.msra.mxu2 %v139_v41 }
  0x1b   :  { %294 = vmatpush.msrb.mxu3 %v1627_v29  ;;  %205 = vmatpush.msra.mxu1 %v138_v40 }
  0x1c   :  { %386 = vmatpush.msrb.mxu0 %v1608_v7  ;;  %426 = vmatpush.msrb.mxu2 %v1658_v42 }
  0x1d   :  { %295 = vmatpush.msrb.mxu3 %v1631_v30  ;;  %406 = vmatpush.msrb.mxu1 %v1623_v24 }
  0x1e   :  { %121 = vperm.xlu0 %1358, %v113_v5   ;;  %387 = vmatpush.msrb.mxu0 %v1610_v8 }
  0x1f   :  { %76 = vperm.xlu1 %1359, %v71_v6   ;;  %296 = vmatpush.msrb.mxu3 %v1634_v31 }
  0x20   :  { %297 = vmatmul.f32.vlgmr.msrb.gmra.mxu3 %v1526_v28  ;;  %407 = vmatpush.msrb.mxu1 %v1627_v29 }
  0x21   :  { %388 = vmatpush.msrb.mxu0 %v1613_v11  ;;  %313 = vmatpush.msra.mxu3 %v1658_v42 }
  0x22   :  { %408 = vmatpush.msrb.mxu1 %v1631_v30  ;;  %427 = vmatpush.msrb.mxu2 %v1660_v43 }
  0x23   :  { %389 = vmatpush.msrb.mxu0 %v1616_v17  ;;  %314 = vmatpush.msra.mxu3 %v1660_v43 }
  0x24   :  { %409 = vmatpush.msrb.mxu1 %v1634_v31  ;;  %428 = vmatpush.msrb.mxu2 %v1664_v44 }
  0x25   :  { %315 = vmatpush.msra.mxu3 %v1664_v44 }
  0x26   :  { %429 = vmatpush.msrb.mxu2 %v1668_v45 }
  0x27   :  { %316 = vmatpush.msra.mxu3 %v1668_v45 }
  0x28   :  { %317 = vmatmul.f32.vlgmr.msra.gmra.mxu3 %v1526_v28 }
  0x29   :  { %514 = vmatpush.msrb.mxu3 %v1608_v7 }
  0x2b   :  { %515 = vmatpush.msrb.mxu3 %v1610_v8 }
  0x2d   :  { %516 = vmatpush.msrb.mxu3 %v1613_v11 }
  0x2f   :  { %517 = vmatpush.msrb.mxu3 %v1616_v17 }
  0x31   :  { %662 = vmatpush.msra.mxu3 %v1623_v24 }
  0x33   :  { %663 = vmatpush.msra.mxu3 %v1627_v29 }
  0x35   :  { %664 = vmatpush.msra.mxu3 %v1631_v30 }
  0x37   :  { %665 = vmatpush.msra.mxu3 %v1634_v31 }
  0x80   :  { %v102_v20 = vpop.permute.xlu0 %101 }
  0x81   :  { %v1618_v21 = vpop.permute.xlu1 %73  ;;  %vm106_vm0 = vcmp.eq.s32.totalorder %v102_v20, %v1621_v23 }
  0x82   :  { %v1304_v32 = vsel %vm106_vm0, 1.0, %v1526_v28  ;;  %vm78_vm2 = vcmp.eq.s32.totalorder %v1618_v21, %v1621_v23  ;;  %v1737_v21 = vld [vmem:[%s1981_s7] ss:$0 sm:$0xff] }
  0x83   :  { %v1302_v46 = vsel %vm78_vm2, 1.0, %v1526_v28 }
  0x88   :  { %v117_v33 = vpop.permute.xlu0 %116 }
  0x89   :  { %v89_v34 = vpop.permute.xlu1 %88  ;;  %v124_v36 = vmul.f32 %v1304_v32, %v117_v33 }
  0x8a   :  { %v1639_v35 = vsel %vm252_vm1, %v89_v34, %v117_v33  ;;  %v96_v47 = vmul.f32 %v1302_v46, %v89_v34  ;;  %v156_v33 = vperm.slane %v1711_v56, 2 }
  0x8b   :  { %128 = vrot.lane.b32.xlu2 %v124_v36, %s1527_s0  ;;  %vm255_vm0 = vcmp.gt.f32.partialorder %v1639_v35, 0.0 }
  0x90   :  { %v1700_v51 = vpop.permute.xlu0 %121 }
  0x91   :  { %v77_v55 = vpop.permute.xlu1 %76 }
  0x92   :  { %vm79_vm6 = vcmp.eq.s32.totalorder %v77_v55, %v1621_v23 }
  0x93   :  { %104 = vperm.xlu2 %1360, %v99_v37   ;;  %v1303_v59 = vsel %vm79_vm6, 1.0, %v1526_v28 }
  0x9b   :  { %93 = vperm.xlu2 %1360, %v85_v38   ;;  %v278_v54 = vpop.f32.mrf.mxu3 }
  0xa3   :  { %v298_v3 = vpop.f32.mrf.mxu3 }
  0xab   :  { %v318_v25 = vpop.f32.mrf.mxu3 }
  0xac   :  { %v361_v36 = vadd.f32 %v1737_v21, %v318_v25 }
  0xe5   :  { %v129_v48 = vpop.permute.xlu2 %128 }
  0xe6   :  { %v135_v49 = vsel %vm134_vm3, %v96_v47, %v129_v48 }
  0xe7   :  { %1306 = vmatmul.msk.f32.vlgmr.msra.gmra.mxu0 %vm160_vm4, %v135_v49  ;;  %1308 = vmatmul.msk.f32.vlgmr.msra.gmra.mxu1 %vm160_vm4, %v135_v49 }
  0xe8   :  { %1310 = vmatmul.msk.f32.vlgmr.msra.gmra.mxu2 %vm160_vm4, %v135_v49  ;;  %534 = vmatpush.msra.mxu0 %v1623_v24 }
  0xe9   :  { %554 = vmatpush.msra.mxu1 %v1658_v42  ;;  %642 = vmatpush.msra.mxu2 %v1608_v7 }
  0xea   :  { %535 = vmatpush.msra.mxu0 %v1627_v29 }
  0xeb   :  { %555 = vmatpush.msra.mxu1 %v1660_v43  ;;  %643 = vmatpush.msra.mxu2 %v1610_v8 }
  0xec   :  { %536 = vmatpush.msra.mxu0 %v1631_v30 }
  0xed   :  { %v105_v50 = vpop.permute.xlu2 %104  ;;  %556 = vmatpush.msra.mxu1 %v1664_v44  ;;  %644 = vmatpush.msra.mxu2 %v1613_v11 }
  0xee   :  { %vm107_vm5 = vcmp.eq.s32.totalorder %v105_v50, %v1621_v23  ;;  %537 = vmatpush.msra.mxu0 %v1634_v31 }
  0xef   :  { %v1305_v52 = vsel %vm107_vm5, 1.0, %v1526_v28  ;;  %557 = vmatpush.msra.mxu1 %v1668_v45  ;;  %645 = vmatpush.msra.mxu2 %v1616_v17 }
  0xf0   :  { %v125_v53 = vmul.f32 %v1305_v52, %v1700_v51 }
  0xf2   :  { %130 = vrot.lane.b32.xlu0 %v125_v53, %s1527_s0 }
  0xf5   :  { %v1714_v57 = vpop.permute.xlu2 %93 }
  0xf6   :  { %v97_v61 = vmul.f32 %v1303_v59, %v1714_v57 }
 0x164   :  { %v131_v62 = vpop.permute.xlu0 %130  ;;  %v184_v63 = vpop.f32.mrf.mxu0 }
 0x165   :  { %v1722_v0 = vadd.f32 %v184_v63, %v154_v58  ;;  %v207_v1 = vpop.f32.mrf.mxu1  ;;  %v136_v2 = vsel %vm134_vm3, %v97_v61, %v131_v62 }
 0x166   :  { %v1727_v4 = vadd.f32 %v207_v1, %v155_v60  ;;  %1307 = vmatmul.msk.f32.gmra.mxu0 %vm160_vm4, %v136_v2  ;;  %1309 = vmatmul.msk.f32.gmra.mxu1 %vm160_vm4, %v136_v2 }
 0x167   :  { %v321_v5 = vadd.f32 %v278_v54, %v1722_v0  ;;  %1311 = vmatmul.msk.f32.gmra.mxu2 %vm160_vm4, %v136_v2 }
 0x168   :  { %v322_v6 = vadd.f32 %v298_v3, %v1727_v4 }
 0x169   :  { %v1312_v9 = vmul.f32 -1.442695, %v321_v5 }
 0x16a   :  { %v1313_v10 = vmul.f32 -1.442695, %v322_v6 }
 0x16b   :  { %1363 = vpow2.f32 %v1312_v9  ;;  %v230_v37 = vpop.f32.mrf.mxu2 }
 0x16c   :  { %1365 = vpow2.f32 %v1313_v10  ;;  %v1743_v47 = vadd.f32 %v230_v37, %v156_v33 }
 0x171   :  { %v1364_v12 = vpop.eup %1363 }
 0x172   :  { %v1366_v13 = vpop.eup %1365  ;;  %v329_v14 = vadd.f32 1.0, %v1364_v12 }
 0x173   :  { %v330_v15 = vadd.f32 1.0, %v1366_v13 }
 0x174   :  { %1367 = vrcp.f32 %v329_v14  ;;  %v342_v26 = vand.u32 2147483648, %v329_v14  ;;  %v340_v28 = vand.u32 2147483647, %v329_v14  ;;  %vm336_vm8 = vweird.f32 %v329_v14 }
 0x175   :  { %1369 = vrcp.f32 %v330_v15  ;;  %v357_v46 = vand.u32 2147483648, %v330_v15  ;;  %vm351_vm12 = vweird.f32 %v330_v15  ;;  %v355_v49 = vand.u32 2147483647, %v330_v15 }
 0x176   :  { %v343_v38 = vor.u32 1.1754944e-38, %v342_v26  ;;  %vm341_vm10 = vcmp.eq.f32.partialorder %v340_v28, 8.507059e+37 }
 0x177   :  { %v358_v53 = vor.u32 1.1754944e-38, %v357_v46  ;;  %vm356_vm14 = vcmp.eq.f32.partialorder %v355_v49, 8.507059e+37 }
 0x17a   :  { %v1368_v16 = vpop.eup %1367 }
 0x17b   :  { %v1370_v18 = vpop.eup %1369  ;;  %v332_v19 = vmul.f32 %v1368_v16, %v329_v14  ;;  %vm337_vm7 = vweird.f32 %v1368_v16 }
 0x17c   :  { %v347_v20 = vmul.f32 %v1370_v18, %v330_v15  ;;  %vm338_vm9 = vmor %vm336_vm8, %vm337_vm7  ;;  %vm352_vm11 = vweird.f32 %v1370_v18 }
 0x17d   :  { %v333_v22 = vsub.f32 1.0, %v332_v19  ;;  %vm353_vm13 = vmor %vm351_vm12, %vm352_vm11 }
 0x17e   :  { %v348_v23 = vsub.f32 1.0, %v347_v20 }
 0x17f   :  { %v334_v27 = vmul.f32 %v1368_v16, %v333_v22 }
 0x180   :  { %v349_v32 = vmul.f32 %v1370_v18, %v348_v23 }
 0x181   :  { %v335_v34 = vadd.f32 %v1368_v16, %v334_v27 }
 0x182   :  { %v350_v40 = vadd.f32 %v1370_v18, %v349_v32 }
 0x183   :  { %v339_v39 = vsel %vm338_vm9, %v1368_v16, %v335_v34 }
 0x184   :  { %v344_v41 = vsel %vm341_vm10, %v343_v38, %v339_v39  ;;  %v354_v52 = vsel %vm353_vm13, %v1370_v18, %v350_v40 }
 0x185   :  { %v362_v48 = vmul.f32 %v361_v36, %v344_v41  ;;  %v359_v54 = vsel %vm356_vm14, %v358_v53, %v354_v52 }
 0x186   :  { %v365_v55 = vsub.f32 1.0, %v359_v54  ;;  %v367_v62 = vmul.f32 0.0, %v359_v54 }
 0x187   :  { %v363_v50 = vadd.f32 %v362_v48, %v1743_v47 }
 0x189   :  { %1371 = vtanh.f32 %v363_v50 }
 0x18f   :  { %v1372_v59 = vpop.eup %1371 }
 0x190   :  { %v366_v61 = vmul.f32 %v1372_v59, %v365_v55 }
 0x192   :  { %v1746_v63 = vadd.f32 %v367_v62, %v366_v61 }
 0x194   :  { %1314 = vmatmul.msk.f32.vlgmr.msrb.gmra.mxu0 %vm257_vm15, %v1746_v63  ;;  %1315 = vmatmul.msk.f32.vlgmr.msrb.gmra.mxu1 %vm257_vm15, %v1746_v63  ;;  %v1756_v1 = vsel %vm255_vm0, %v1746_v63, -1000000.0 }
 0x195   :  { %1316 = vmatmul.msk.f32.vlgmr.msrb.gmra.mxu2 %vm257_vm15, %v1746_v63  ;;  %682 = vmatpush.msrb.mxu0 %v1658_v42 }
 0x196   :  { %770 = vmatpush.msrb.mxu1 %v1608_v7  ;;  %790 = vmatpush.msrb.mxu2 %v1623_v24 }
 0x197   :  { %683 = vmatpush.msrb.mxu0 %v1660_v43 }
 0x198   :  { %771 = vmatpush.msrb.mxu1 %v1610_v8  ;;  %791 = vmatpush.msrb.mxu2 %v1627_v29 }
 0x199   :  { %684 = vmatpush.msrb.mxu0 %v1664_v44 }
 0x19a   :  { %772 = vmatpush.msrb.mxu1 %v1613_v11  ;;  %792 = vmatpush.msrb.mxu2 %v1631_v30 }
 0x19b   :  { %685 = vmatpush.msrb.mxu0 %v1668_v45 }
 0x19c   :  { %773 = vmatpush.msrb.mxu1 %v1616_v17  ;;  %793 = vmatpush.msrb.mxu2 %v1634_v31 }
 0x1e3   :  { %v1772_v2 = vpop.f32.mrf.mxu0  ;;  %v1774_v3 = vpop.f32.mrf.mxu1 }
 0x1ea   :  { %v1778_v22 = vpop.f32.mrf.mxu2 }
 0x211   :  { %v391_v5 = vpop.f32.mrf.mxu0  ;;  %v411_v6 = vpop.f32.mrf.mxu1 }
 0x212   :  { %v436_v9 = vrot.slane %v391_v5, 6  ;;  %v437_v10 = vrot.slane %v411_v6, 6 }
 0x214   :  { %v440_v12 = vadd.f32 %v436_v9, %v1722_v0  ;;  %v441_v13 = vadd.f32 %v437_v10, %v1727_v4  ;;  %v489_v9 = vrot.slane %v1746_v63, 6 }
 0x216   :  { %v1317_v14 = vmul.f32 -1.442695, %v440_v12  ;;  %v1318_v15 = vmul.f32 -1.442695, %v441_v13 }
 0x218   :  { %1373 = vpow2.f32 %v1317_v14  ;;  %v431_v28 = vpop.f32.mrf.mxu2 }
 0x219   :  { %1375 = vpow2.f32 %v1318_v15  ;;  %v480_v39 = vadd.f32 %v1737_v21, %v431_v28 }
 0x21b   :  { %v482_v49 = vrot.slane %v480_v39, 6 }
 0x21e   :  { %v1374_v16 = vpop.eup %1373 }
 0x21f   :  { %v1376_v18 = vpop.eup %1375  ;;  %v448_v19 = vadd.f32 1.0, %v1374_v16 }
 0x220   :  { %v449_v20 = vadd.f32 1.0, %v1376_v18  ;;  %v370_v18 = vmax.f32 %v1756_v1, -1000000.0 }
 0x221   :  { %1377 = vrcp.f32 %v448_v19  ;;  %v461_v36 = vand.u32 2147483648, %v448_v19  ;;  %v459_v38 = vand.u32 2147483647, %v448_v19  ;;  %vm455_vm3 = vweird.f32 %v448_v19 }
 0x222   :  { %1379 = vrcp.f32 %v449_v20  ;;  %v476_v53 = vand.u32 2147483648, %v449_v20  ;;  %vm470_vm7 = vweird.f32 %v449_v20  ;;  %v474_v55 = vand.u32 2147483647, %v449_v20 }
 0x223   :  { %v462_v46 = vor.u32 1.1754944e-38, %v461_v36  ;;  %vm460_vm5 = vcmp.eq.f32.partialorder %v459_v38, 8.507059e+37 }
 0x224   :  { %v477_v62 = vor.u32 1.1754944e-38, %v476_v53  ;;  %vm475_vm9 = vcmp.eq.f32.partialorder %v474_v55, 8.507059e+37 }
 0x227   :  { %v1378_v23 = vpop.eup %1377 }
 0x228   :  { %v1380_v25 = vpop.eup %1379  ;;  %v451_v26 = vmul.f32 %v1378_v23, %v448_v19  ;;  %vm456_vm2 = vweird.f32 %v1378_v23 }
 0x229   :  { %v466_v27 = vmul.f32 %v1380_v25, %v449_v20  ;;  %vm457_vm4 = vmor %vm455_vm3, %vm456_vm2  ;;  %vm471_vm6 = vweird.f32 %v1380_v25 }
 0x22a   :  { %v452_v32 = vsub.f32 1.0, %v451_v26  ;;  %vm472_vm8 = vmor %vm470_vm7, %vm471_vm6 }
 0x22b   :  { %v467_v34 = vsub.f32 1.0, %v466_v27 }
 0x22c   :  { %v453_v37 = vmul.f32 %v1378_v23, %v452_v32 }
 0x22d   :  { %v468_v40 = vmul.f32 %v1380_v25, %v467_v34 }
 0x22e   :  { %v454_v41 = vadd.f32 %v1378_v23, %v453_v37 }
 0x22f   :  { %v469_v52 = vadd.f32 %v1380_v25, %v468_v40 }
 0x230   :  { %v458_v48 = vsel %vm457_vm4, %v1378_v23, %v454_v41 }
 0x231   :  { %v463_v50 = vsel %vm460_vm5, %v462_v46, %v458_v48  ;;  %v473_v61 = vsel %vm472_vm8, %v1380_v25, %v469_v52 }
 0x232   :  { %v484_v54 = vmul.f32 %v482_v49, %v463_v50  ;;  %v478_v5 = vsel %vm475_vm9, %v477_v62, %v473_v61 }
 0x233   :  { %v487_v6 = vsub.f32 1.0, %v478_v5  ;;  %v491_v13 = vmul.f32 %v489_v9, %v478_v5 }
 0x234   :  { %v485_v59 = vadd.f32 %v484_v54, %v1743_v47 }
 0x236   :  { %1381 = vtanh.f32 %v485_v59 }
 0x23c   :  { %v1382_v10 = vpop.eup %1381 }
 0x23d   :  { %v488_v12 = vmul.f32 %v1382_v10, %v487_v6 }
 0x23f   :  { %v1783_v14 = vadd.f32 %v491_v13, %v488_v12 }
 0x241   :  { %v493_v15 = vsel %vm255_vm0, %v1783_v14, -1000000.0  ;;  %v499_v16 = vrot.slane %v1783_v14, 2 }
 0x242   :  { %v495_v19 = vrot.slane %v493_v15, 2 }
 0x243   :  { %1319 = vmatmul.msk.f32.vlgmr.msrb.gmra.mxu3 %vm257_vm15, %v499_v16  ;;  %1320 = vmatmul.msk.f32.vlgmr.msra.gmra.mxu0 %vm257_vm15, %v499_v16 }
 0x244   :  { %v1792_v20 = vmax.f32 %v370_v18, %v495_v19  ;;  %1321 = vmatmul.msk.f32.vlgmr.msra.gmra.mxu1 %vm257_vm15, %v499_v16  ;;  %810 = vmatpush.msrb.mxu3 %v1658_v42 }
 0x245   :  { %884 = vmatpush.msra.mxu0 %v1608_v7  ;;  %904 = vmatpush.msra.mxu1 %v1623_v24 }
 0x246   :  { %811 = vmatpush.msrb.mxu3 %v1660_v43 }
 0x247   :  { %885 = vmatpush.msra.mxu0 %v1610_v8  ;;  %905 = vmatpush.msra.mxu1 %v1627_v29 }
 0x248   :  { %812 = vmatpush.msrb.mxu3 %v1664_v44 }
 0x249   :  { %886 = vmatpush.msra.mxu0 %v1613_v11  ;;  %906 = vmatpush.msra.mxu1 %v1631_v30 }
 0x24a   :  { %813 = vmatpush.msrb.mxu3 %v1668_v45 }
 0x24b   :  { %887 = vmatpush.msra.mxu0 %v1616_v17  ;;  %907 = vmatpush.msra.mxu1 %v1634_v31 }
 0x2c0   :  { %v539_v63 = vpop.f32.mrf.mxu0 }
 0x2c1   :  { %v565_v1 = vrot.slane %v539_v63, 4  ;;  %v559_v49 = vpop.f32.mrf.mxu1 }
 0x2c2   :  { %v608_v53 = vadd.f32 %v1737_v21, %v559_v49 }
 0x2c3   :  { %v569_v23 = vadd.f32 %v565_v1, %v1727_v4  ;;  %v617_v1 = vrot.slane %v1783_v14, 6 }
 0x2c4   :  { %v610_v5 = vrot.slane %v608_v53, 4 }
 0x2c5   :  { %v1323_v25 = vmul.f32 -1.442695, %v569_v23 }
 0x2c6   :  { %v519_v26 = vpop.f32.mrf.mxu3 }
 0x2c7   :  { %1383 = vpow2.f32 %v1323_v25  ;;  %v564_v27 = vrot.slane %v519_v26, 4 }
 0x2c9   :  { %v568_v28 = vadd.f32 %v564_v27, %v1722_v0 }
 0x2cb   :  { %v1322_v32 = vmul.f32 -1.442695, %v568_v28 }
 0x2cd   :  { %v1384_v34 = vpop.eup %1383  ;;  %1385 = vpow2.f32 %v1322_v32 }
 0x2ce   :  { %v577_v36 = vadd.f32 1.0, %v1384_v34 }
 0x2d0   :  { %1387 = vrcp.f32 %v577_v36  ;;  %v604_v12 = vand.u32 2147483648, %v577_v36  ;;  %vm598_vm2 = vweird.f32 %v577_v36  ;;  %v602_v15 = vand.u32 2147483647, %v577_v36 }
 0x2d2   :  { %v605_v19 = vor.u32 1.1754944e-38, %v604_v12  ;;  %vm603_vm4 = vcmp.eq.f32.partialorder %v602_v15, 8.507059e+37 }
 0x2d3   :  { %v1386_v37 = vpop.eup %1385 }
 0x2d4   :  { %v576_v38 = vadd.f32 1.0, %v1386_v37 }
 0x2d6   :  { %1389 = vrcp.f32 %v576_v38  ;;  %v1388_v39 = vpop.eup %1387  ;;  %v589_v52 = vand.u32 2147483648, %v576_v38  ;;  %v587_v55 = vand.u32 2147483647, %v576_v38  ;;  %vm583_vm11 = vweird.f32 %v576_v38 }
 0x2d7   :  { %v594_v40 = vmul.f32 %v1388_v39, %v577_v36  ;;  %vm599_vm14 = vweird.f32 %v1388_v39 }
 0x2d8   :  { %v590_v62 = vor.u32 1.1754944e-38, %v589_v52  ;;  %vm588_vm13 = vcmp.eq.f32.partialorder %v587_v55, 8.507059e+37  ;;  %vm600_vm3 = vmor %vm598_vm2, %vm599_vm14 }
 0x2d9   :  { %v595_v48 = vsub.f32 1.0, %v594_v40 }
 0x2db   :  { %v596_v59 = vmul.f32 %v1388_v39, %v595_v48 }
 0x2dc   :  { %v1390_v41 = vpop.eup %1389 }
 0x2dd   :  { %v579_v46 = vmul.f32 %v1390_v41, %v576_v38  ;;  %vm584_vm10 = vweird.f32 %v1390_v41  ;;  %v597_v9 = vadd.f32 %v1388_v39, %v596_v59 }
 0x2de   :  { %vm585_vm12 = vmor %vm583_vm11, %vm584_vm10 }
 0x2df   :  { %v580_v50 = vsub.f32 1.0, %v579_v46  ;;  %v601_v18 = vsel %vm600_vm3, %v1388_v39, %v597_v9 }
 0x2e0   :  { %v606_v63 = vsel %vm603_vm4, %v605_v19, %v601_v18 }
 0x2e1   :  { %v581_v54 = vmul.f32 %v1390_v41, %v580_v50  ;;  %v615_v23 = vsub.f32 1.0, %v606_v63  ;;  %v619_v27 = vmul.f32 %v617_v1, %v606_v63 }
 0x2e3   :  { %v582_v61 = vadd.f32 %v1390_v41, %v581_v54 }
 0x2e5   :  { %v586_v6 = vsel %vm585_vm12, %v1390_v41, %v582_v61 }
 0x2e6   :  { %v591_v10 = vsel %vm588_vm13, %v590_v62, %v586_v6 }
 0x2e7   :  { %v612_v13 = vmul.f32 %v610_v5, %v591_v10 }
 0x2e9   :  { %v613_v16 = vadd.f32 %v612_v13, %v1743_v47 }
 0x2eb   :  { %1391 = vtanh.f32 %v613_v16 }
 0x2f1   :  { %v1392_v25 = vpop.eup %1391 }
 0x2f2   :  { %v616_v26 = vmul.f32 %v1392_v25, %v615_v23 }
 0x2f4   :  { %v1812_v28 = vadd.f32 %v619_v27, %v616_v26 }
 0x2f6   :  { %v621_v32 = vsel %vm255_vm0, %v1812_v28, -1000000.0  ;;  %v627_v34 = vrot.slane %v1812_v28, 4 }
 0x2f7   :  { %v623_v36 = vrot.slane %v621_v32, 4 }
 0x2f8   :  { %1324 = vmatmul.msk.f32.vlgmr.msra.gmra.mxu2 %vm257_vm15, %v627_v34  ;;  %1325 = vmatmul.msk.f32.vlgmr.msra.gmra.mxu3 %vm257_vm15, %v627_v34 }
 0x2f9   :  { %1326 = vmatmul.msk.f32.vlgmr.msrb.gmra.mxu0 %vm257_vm15, %v627_v34  ;;  %v1822_v14 = vmax.f32 %v1792_v20, %v623_v36  ;;  %924 = vmatpush.msra.mxu2 %v1658_v42 }
 0x2fa   :  { %1012 = vmatpush.msra.mxu3 %v1608_v7  ;;  %1032 = vmatpush.msrb.mxu0 %v1623_v24 }
 0x2fb   :  { %925 = vmatpush.msra.mxu2 %v1660_v43 }
 0x2fc   :  { %1013 = vmatpush.msra.mxu3 %v1610_v8  ;;  %1033 = vmatpush.msrb.mxu0 %v1627_v29 }
 0x2fd   :  { %926 = vmatpush.msra.mxu2 %v1664_v44 }
 0x2fe   :  { %1014 = vmatpush.msra.mxu3 %v1613_v11  ;;  %1034 = vmatpush.msrb.mxu0 %v1631_v30 }
 0x2ff   :  { %927 = vmatpush.msra.mxu2 %v1668_v45 }
 0x300   :  { %1015 = vmatpush.msra.mxu3 %v1616_v17  ;;  %1035 = vmatpush.msrb.mxu0 %v1634_v31 }
 0x376   :  { %v687_v61 = vpop.f32.mrf.mxu0 }
 0x37b   :  { %v647_v20 = vpop.f32.mrf.mxu2  ;;  %v667_v37 = vpop.f32.mrf.mxu3 }
 0x37c   :  { %v692_v38 = vrot.slane %v647_v20, 2  ;;  %v693_v39 = vrot.slane %v667_v37, 2  ;;  %v745_v20 = vrot.slane %v1812_v28, 6 }
 0x37e   :  { %v696_v40 = vadd.f32 %v692_v38, %v1722_v0  ;;  %v697_v41 = vadd.f32 %v693_v39, %v1727_v4  ;;  %v736_v4 = vadd.f32 %v1737_v21, %v687_v61 }
 0x380   :  { %v1327_v46 = vmul.f32 -1.442695, %v696_v40  ;;  %v1328_v48 = vmul.f32 -1.442695, %v697_v41  ;;  %v738_v16 = vrot.slane %v736_v4, 2 }
 0x382   :  { %1393 = vpow2.f32 %v1327_v46 }
 0x383   :  { %1395 = vpow2.f32 %v1328_v48 }
 0x388   :  { %v1394_v49 = vpop.eup %1393 }
 0x389   :  { %v1396_v50 = vpop.eup %1395  ;;  %v704_v52 = vadd.f32 1.0, %v1394_v49 }
 0x38a   :  { %v705_v53 = vadd.f32 1.0, %v1396_v50 }
 0x38b   :  { %1397 = vrcp.f32 %v704_v52  ;;  %v717_v6 = vand.u32 2147483648, %v704_v52  ;;  %v715_v10 = vand.u32 2147483647, %v704_v52  ;;  %vm711_vm6 = vweird.f32 %v704_v52 }
 0x38c   :  { %1399 = vrcp.f32 %v705_v53  ;;  %v732_v23 = vand.u32 2147483648, %v705_v53  ;;  %vm726_vm10 = vweird.f32 %v705_v53  ;;  %v730_v25 = vand.u32 2147483647, %v705_v53 }
 0x38d   :  { %v718_v15 = vor.u32 1.1754944e-38, %v717_v6  ;;  %vm716_vm8 = vcmp.eq.f32.partialorder %v715_v10, 8.507059e+37 }
 0x38e   :  { %v733_v32 = vor.u32 1.1754944e-38, %v732_v23  ;;  %vm731_vm12 = vcmp.eq.f32.partialorder %v730_v25, 8.507059e+37 }
 0x391   :  { %v1398_v54 = vpop.eup %1397 }
 0x392   :  { %v1400_v55 = vpop.eup %1399  ;;  %v707_v59 = vmul.f32 %v1398_v54, %v704_v52  ;;  %vm712_vm5 = vweird.f32 %v1398_v54 }
 0x393   :  { %v722_v62 = vmul.f32 %v1400_v55, %v705_v53  ;;  %vm713_vm7 = vmor %vm711_vm6, %vm712_vm5  ;;  %vm727_vm9 = vweird.f32 %v1400_v55 }
 0x394   :  { %v708_v5 = vsub.f32 1.0, %v707_v59  ;;  %vm728_vm11 = vmor %vm726_vm10, %vm727_vm9 }
 0x395   :  { %v723_v0 = vsub.f32 1.0, %v722_v62 }
 0x396   :  { %v709_v9 = vmul.f32 %v1398_v54, %v708_v5 }
 0x397   :  { %v724_v12 = vmul.f32 %v1400_v55, %v723_v0  ;;  %v1882_v0 = vadd.f32 %v1778_v22, %v156_v33  ;;  %v1888_v33 = vsel %vm252_vm1, %v1714_v57, %v1700_v51 }
 0x398   :  { %v710_v13 = vadd.f32 %v1398_v54, %v709_v9 }
 0x399   :  { %v725_v63 = vadd.f32 %v1400_v55, %v724_v12 }
 0x39a   :  { %v714_v18 = vsel %vm713_vm7, %v1398_v54, %v710_v13  ;;  %vm256_vm7 = vcmp.gt.f32.partialorder %v1888_v33, 0.0 }
 0x39b   :  { %v719_v19 = vsel %vm716_vm8, %v718_v15, %v714_v18  ;;  %v729_v27 = vsel %vm728_vm11, %v1400_v55, %v725_v63 }
 0x39c   :  { %v740_v1 = vmul.f32 %v738_v16, %v719_v19  ;;  %v734_v34 = vsel %vm731_vm12, %v733_v32, %v729_v27 }
 0x39d   :  { %v743_v36 = vsub.f32 1.0, %v734_v34  ;;  %v747_v39 = vmul.f32 %v745_v20, %v734_v34 }
 0x39e   :  { %v741_v26 = vadd.f32 %v740_v1, %v1743_v47 }
 0x3a0   :  { %1401 = vtanh.f32 %v741_v26 }
 0x3a6   :  { %v1402_v37 = vpop.eup %1401 }
 0x3a7   :  { %v744_v38 = vmul.f32 %v1402_v37, %v743_v36 }
 0x3a9   :  { %v748_v40 = vadd.f32 %v747_v39, %v744_v38 }
 0x3ab   :  { %v749_v41 = vsel %vm255_vm0, %v748_v40, -1000000.0  ;;  %v1843_v46 = vrot.slane %v748_v40, 6 }
 0x3ac   :  { %v751_v48 = vrot.slane %v749_v41, 6 }
 0x3ad   :  { %1329 = vmatmul.msk.f32.vlgmr.msrb.gmra.mxu1 %vm257_vm15, %v1843_v46  ;;  %1330 = vmatmul.msk.f32.vlgmr.msrb.gmra.mxu2 %vm257_vm15, %v1843_v46 }
 0x3ae   :  { %v1850_v47 = vmax.f32 %v1822_v14, %v751_v48  ;;  %1331 = vmatmul.msk.f32.vlgmr.msrb.gmra.mxu3 %vm257_vm15, %v1843_v46  ;;  %1052 = vmatpush.msrb.mxu1 %v1658_v42 }
 0x3af   :  { %1140 = vmatpush.msrb.mxu2 %v1608_v7  ;;  %1160 = vmatpush.msrb.mxu3 %v1623_v24  ;;  %v1869_v7 = vadd.f32 %v1772_v2, %v154_v58 }
 0x3b0   :  { %1053 = vmatpush.msrb.mxu1 %v1660_v43 }
 0x3b1   :  { %1141 = vmatpush.msrb.mxu2 %v1610_v8  ;;  %1161 = vmatpush.msrb.mxu3 %v1627_v29 }
 0x3b2   :  { %1054 = vmatpush.msrb.mxu1 %v1664_v44 }
 0x3b3   :  { %1142 = vmatpush.msrb.mxu2 %v1613_v11  ;;  %1162 = vmatpush.msrb.mxu3 %v1631_v30  ;;  %v1875_v11 = vadd.f32 %v1774_v3, %v155_v60 }
 0x3b4   :  { %1055 = vmatpush.msrb.mxu1 %v1668_v45 }
 0x3b5   :  { %1143 = vmatpush.msrb.mxu2 %v1616_v17  ;;  %1163 = vmatpush.msrb.mxu3 %v1634_v31 }
 0x42a   :  { %v775_v8 = vpop.f32.mrf.mxu1 }
 0x42b   :  { %v818_v24 = vadd.f32 %v775_v8, %v1869_v7 }
 0x42d   :  { %v1332_v29 = vmul.f32 -1.442695, %v818_v24 }
 0x42f   :  { %1403 = vpow2.f32 %v1332_v29 }
 0x430   :  { %v795_v30 = vpop.f32.mrf.mxu2 }
 0x431   :  { %v819_v17 = vadd.f32 %v795_v30, %v1875_v11  ;;  %v815_v54 = vpop.f32.mrf.mxu3 }
 0x432   :  { %v858_v6 = vadd.f32 %v1737_v21, %v815_v54 }
 0x433   :  { %v1333_v35 = vmul.f32 -1.442695, %v819_v17 }
 0x435   :  { %v1404_v31 = vpop.eup %1403  ;;  %1405 = vpow2.f32 %v1333_v35 }
 0x436   :  { %v826_v28 = vadd.f32 1.0, %v1404_v31 }
 0x438   :  { %1407 = vrcp.f32 %v826_v28  ;;  %v839_v52 = vand.u32 2147483648, %v826_v28  ;;  %v837_v60 = vand.u32 2147483647, %v826_v28  ;;  %vm833_vm13 = vweird.f32 %v826_v28 }
 0x43a   :  { %v840_v61 = vor.u32 1.1754944e-38, %v839_v52  ;;  %vm838_vm2 = vcmp.eq.f32.partialorder %v837_v60, 8.507059e+37 }
 0x43b   :  { %v1406_v58 = vpop.eup %1405 }
 0x43c   :  { %v827_v2 = vadd.f32 1.0, %v1406_v58 }
 0x43e   :  { %v1408_v14 = vpop.eup %1407  ;;  %1409 = vrcp.f32 %v827_v2  ;;  %v854_v10 = vand.u32 2147483648, %v827_v2  ;;  %v852_v13 = vand.u32 2147483647, %v827_v2  ;;  %vm848_vm4 = vweird.f32 %v827_v2 }
 0x43f   :  { %v829_v49 = vmul.f32 %v1408_v14, %v826_v28  ;;  %vm834_vm0 = vweird.f32 %v1408_v14 }
 0x440   :  { %vm835_vm14 = vmor %vm833_vm13, %vm834_vm0  ;;  %v855_v18 = vor.u32 1.1754944e-38, %v854_v10  ;;  %vm853_vm6 = vcmp.eq.f32.partialorder %v852_v13, 8.507059e+37 }
 0x441   :  { %v830_v50 = vsub.f32 1.0, %v829_v49 }
 0x443   :  { %v831_v53 = vmul.f32 %v1408_v14, %v830_v50 }
 0x444   :  { %v1410_v3 = vpop.eup %1409 }
 0x445   :  { %v844_v55 = vmul.f32 %v1410_v3, %v827_v2  ;;  %v832_v59 = vadd.f32 %v1408_v14, %v831_v53  ;;  %vm849_vm3 = vweird.f32 %v1410_v3 }
 0x446   :  { %vm850_vm5 = vmor %vm848_vm4, %vm849_vm3 }
 0x447   :  { %v845_v62 = vsub.f32 1.0, %v844_v55  ;;  %v836_v5 = vsel %vm835_vm14, %v1408_v14, %v832_v59 }
 0x448   :  { %v841_v4 = vsel %vm838_vm2, %v840_v61, %v836_v5 }
 0x449   :  { %v846_v9 = vmul.f32 %v1410_v3, %v845_v62  ;;  %v859_v12 = vmul.f32 %v858_v6, %v841_v4 }
 0x44b   :  { %v847_v15 = vadd.f32 %v1410_v3, %v846_v9  ;;  %v860_v16 = vadd.f32 %v859_v12, %v1882_v0 }
 0x44d   :  { %v851_v19 = vsel %vm850_vm5, %v1410_v3, %v847_v15  ;;  %1411 = vtanh.f32 %v860_v16 }
 0x44e   :  { %v856_v63 = vsel %vm853_vm6, %v855_v18, %v851_v19 }
 0x44f   :  { %v862_v56 = vsub.f32 1.0, %v856_v63  ;;  %v865_v23 = vmul.f32 %v856_v63, %v1843_v46 }
 0x453   :  { %v1412_v1 = vpop.eup %1411 }
 0x454   :  { %v863_v22 = vmul.f32 %v1412_v1, %v862_v56 }
 0x456   :  { %v1891_v25 = vadd.f32 %v865_v23, %v863_v22 }
 0x458   :  { %1334 = vmatmul.msk.f32.vlgmr.msra.gmra.mxu0 %vm257_vm15, %v1891_v25  ;;  %1335 = vmatmul.msk.f32.vlgmr.msra.gmra.mxu1 %vm257_vm15, %v1891_v25  ;;  %v1901_v26 = vsel %vm256_vm7, %v1891_v25, -1000000.0  ;;  %v987_v62 = vrot.slane %v1891_v25, 6 }
 0x459   :  { %1336 = vmatmul.msk.f32.vlgmr.msra.gmra.mxu2 %vm257_vm15, %v1891_v25  ;;  %1180 = vmatpush.msra.mxu0 %v1658_v42  ;;  %v868_v51 = vmax.f32 %v1850_v47, %v1901_v26 }
 0x45b   :  { %1181 = vmatpush.msra.mxu0 %v1660_v43 }
 0x45d   :  { %1182 = vmatpush.msra.mxu0 %v1664_v44 }
 0x45f   :  { %1183 = vmatpush.msra.mxu0 %v1668_v45 }
 0x4d5   :  { %v889_v57 = vpop.f32.mrf.mxu0  ;;  %v909_v27 = vpop.f32.mrf.mxu1 }
 0x4d6   :  { %v934_v32 = vrot.slane %v889_v57, 6  ;;  %v935_v34 = vrot.slane %v909_v27, 6 }
 0x4d8   :  { %v938_v36 = vadd.f32 %v934_v32, %v1869_v7  ;;  %v939_v20 = vadd.f32 %v935_v34, %v1875_v11 }
 0x4da   :  { %v1337_v37 = vmul.f32 -1.442695, %v938_v36  ;;  %v1338_v38 = vmul.f32 -1.442695, %v939_v20 }
 0x4dc   :  { %1413 = vpow2.f32 %v1337_v37  ;;  %v929_v48 = vpop.f32.mrf.mxu2 }
 0x4dd   :  { %1415 = vpow2.f32 %v1338_v38  ;;  %v978_v35 = vadd.f32 %v1737_v21, %v929_v48 }
 0x4df   :  { %v980_v14 = vrot.slane %v978_v35, 6 }
 0x4e2   :  { %v1414_v42 = vpop.eup %1413 }
 0x4e3   :  { %v1416_v39 = vpop.eup %1415  ;;  %v946_v40 = vadd.f32 1.0, %v1414_v42 }
 0x4e4   :  { %v947_v43 = vadd.f32 1.0, %v1416_v39 }
 0x4e5   :  { %1417 = vrcp.f32 %v946_v40  ;;  %v959_v29 = vand.u32 2147483648, %v946_v40  ;;  %v957_v17 = vand.u32 2147483647, %v946_v40  ;;  %vm953_vm8 = vweird.f32 %v946_v40 }
 0x4e6   :  { %1419 = vrcp.f32 %v947_v43  ;;  %v974_v52 = vand.u32 2147483648, %v947_v43  ;;  %vm968_vm12 = vweird.f32 %v947_v43  ;;  %v972_v60 = vand.u32 2147483647, %v947_v43 }
 0x4e7   :  { %v960_v58 = vor.u32 1.1754944e-38, %v959_v29  ;;  %vm958_vm10 = vcmp.eq.f32.partialorder %v957_v17, 8.507059e+37 }
 0x4e8   :  { %v975_v55 = vor.u32 1.1754944e-38, %v974_v52  ;;  %vm973_vm13 = vcmp.eq.f32.partialorder %v972_v60, 8.507059e+37 }
 0x4eb   :  { %v1418_v44 = vpop.eup %1417 }
 0x4ec   :  { %v1420_v45 = vpop.eup %1419  ;;  %v949_v41 = vmul.f32 %v1418_v44, %v946_v40  ;;  %vm954_vm1 = vweird.f32 %v1418_v44 }
 0x4ed   :  { %v964_v46 = vmul.f32 %v1420_v45, %v947_v43  ;;  %vm955_vm9 = vmor %vm953_vm8, %vm954_vm1  ;;  %vm969_vm11 = vweird.f32 %v1420_v45 }
 0x4ee   :  { %v950_v8 = vsub.f32 1.0, %v949_v41  ;;  %vm970_vm0 = vmor %vm968_vm12, %vm969_vm11 }
 0x4ef   :  { %v965_v24 = vsub.f32 1.0, %v964_v46 }
 0x4f0   :  { %v951_v30 = vmul.f32 %v1418_v44, %v950_v8 }
 0x4f1   :  { %v966_v31 = vmul.f32 %v1420_v45, %v965_v24 }
 0x4f2   :  { %v952_v28 = vadd.f32 %v1418_v44, %v951_v30 }
 0x4f3   :  { %v967_v50 = vadd.f32 %v1420_v45, %v966_v31 }
 0x4f4   :  { %v956_v2 = vsel %vm955_vm9, %v1418_v44, %v952_v28 }
 0x4f5   :  { %v961_v49 = vsel %vm958_vm10, %v960_v58, %v956_v2  ;;  %v971_v54 = vsel %vm970_vm0, %v1420_v45, %v967_v50 }
 0x4f6   :  { %v982_v53 = vmul.f32 %v980_v14, %v961_v49  ;;  %v976_v59 = vsel %vm973_vm13, %v975_v55, %v971_v54 }
 0x4f7   :  { %v985_v61 = vsub.f32 1.0, %v976_v59  ;;  %v989_v4 = vmul.f32 %v987_v62, %v976_v59 }
 0x4f8   :  { %v983_v3 = vadd.f32 %v982_v53, %v1882_v0 }
 0x4fa   :  { %1421 = vtanh.f32 %v983_v3 }
 0x500   :  { %v1422_v5 = vpop.eup %1421 }
 0x501   :  { %v986_v6 = vmul.f32 %v1422_v5, %v985_v61 }
 0x503   :  { %v1916_v9 = vadd.f32 %v989_v4, %v986_v6 }
 0x505   :  { %v997_v10 = vrot.slane %v1916_v9, 2  ;;  %v991_v12 = vsel %vm256_vm7, %v1916_v9, -1000000.0  ;;  %v1115_v58 = vrot.slane %v1916_v9, 6 }
 0x506   :  { %v993_v13 = vrot.slane %v991_v12, 2  ;;  %v1254_v12 = vld [vmem:[%s1982_s8 + $0x10] sm:$0xff] }
 0x507   :  { %1339 = vmatmul.msk.f32.vlgmr.msra.gmra.mxu3 %vm257_vm15, %v997_v10  ;;  %1340 = vmatmul.msk.f32.vlgmr.msrb.gmra.mxu0 %vm257_vm15, %v997_v10 }
 0x508   :  { %1341 = vmatmul.msk.f32.vlgmr.msrb.gmra.mxu1 %vm257_vm15, %v997_v10  ;;  %v1928_v15 = vmax.f32 %v868_v51, %v993_v13  ;;  %v1255_v10 = vld [vmem:[%s1982_s8 + $0x18] sm:$0xff]  ;;  %v1253_v13 = vld [vmem:[%s1982_s8 + $0x8] sm:$0xff] }
 0x509   :  { %1275 = vmatpush.msra.mxu1 %v1255_v10 }
 0x50b   :  { %1276 = vmatpush.msra.mxu1 %v1254_v12 }
 0x50d   :  { %1277 = vmatpush.msra.mxu1 %v1253_v13 }
 0x584   :  { %v1037_v16 = vpop.f32.mrf.mxu0 }
 0x585   :  { %v1063_v18 = vrot.slane %v1037_v16, 4  ;;  %v1057_v20 = vpop.f32.mrf.mxu1 }
 0x586   :  { %v1106_v42 = vadd.f32 %v1737_v21, %v1057_v20 }
 0x587   :  { %v1067_v19 = vadd.f32 %v1063_v18, %v1875_v11 }
 0x588   :  { %v1108_v41 = vrot.slane %v1106_v42, 4 }
 0x589   :  { %v1343_v63 = vmul.f32 -1.442695, %v1067_v19 }
 0x58a   :  { %v1017_v56 = vpop.f32.mrf.mxu3 }
 0x58b   :  { %1423 = vpow2.f32 %v1343_v63  ;;  %v1062_v1 = vrot.slane %v1017_v56, 4 }
 0x58d   :  { %v1066_v22 = vadd.f32 %v1062_v1, %v1869_v7 }
 0x58f   :  { %v1342_v23 = vmul.f32 -1.442695, %v1066_v22 }
 0x591   :  { %v1424_v25 = vpop.eup %1423  ;;  %1425 = vpow2.f32 %v1342_v23 }
 0x592   :  { %v1075_v57 = vadd.f32 1.0, %v1424_v25 }
 0x594   :  { %1427 = vrcp.f32 %v1075_v57  ;;  %v1102_v24 = vand.u32 2147483648, %v1075_v57  ;;  %vm1096_vm6 = vweird.f32 %v1075_v57  ;;  %v1100_v30 = vand.u32 2147483647, %v1075_v57 }
 0x596   :  { %v1103_v31 = vor.u32 1.1754944e-38, %v1102_v24  ;;  %vm1101_vm8 = vcmp.eq.f32.partialorder %v1100_v30, 8.507059e+37 }
 0x597   :  { %v1426_v27 = vpop.eup %1425 }
 0x598   :  { %v1074_v32 = vadd.f32 1.0, %v1426_v27 }
 0x59a   :  { %1429 = vrcp.f32 %v1074_v32  ;;  %v1428_v47 = vpop.eup %1427  ;;  %v1087_v38 = vand.u32 2147483648, %v1074_v32  ;;  %v1085_v40 = vand.u32 2147483647, %v1074_v32  ;;  %vm1081_vm2 = vweird.f32 %v1074_v32 }
 0x59b   :  { %v1092_v26 = vmul.f32 %v1428_v47, %v1075_v57  ;;  %vm1097_vm5 = vweird.f32 %v1428_v47 }
 0x59c   :  { %v1088_v45 = vor.u32 1.1754944e-38, %v1087_v38  ;;  %vm1086_vm4 = vcmp.eq.f32.partialorder %v1085_v40, 8.507059e+37  ;;  %vm1098_vm1 = vmor %vm1096_vm6, %vm1097_vm5 }
 0x59d   :  { %v1093_v36 = vsub.f32 1.0, %v1092_v26 }
 0x59f   :  { %v1094_v43 = vmul.f32 %v1428_v47, %v1093_v36 }
 0x5a0   :  { %v1430_v51 = vpop.eup %1429 }
 0x5a1   :  { %v1077_v34 = vmul.f32 %v1430_v51, %v1074_v32  ;;  %vm1082_vm14 = vweird.f32 %v1430_v51  ;;  %v1095_v48 = vadd.f32 %v1428_v47, %v1094_v43 }
 0x5a2   :  { %vm1083_vm3 = vmor %vm1081_vm2, %vm1082_vm14 }
 0x5a3   :  { %v1078_v37 = vsub.f32 1.0, %v1077_v34  ;;  %v1099_v35 = vsel %vm1098_vm1, %v1428_v47, %v1095_v48 }
 0x5a4   :  { %v1104_v28 = vsel %vm1101_vm8, %v1103_v31, %v1099_v35 }
 0x5a5   :  { %v1079_v39 = vmul.f32 %v1430_v51, %v1078_v37  ;;  %v1113_v2 = vsub.f32 1.0, %v1104_v28  ;;  %v1117_v50 = vmul.f32 %v1115_v58, %v1104_v28 }
 0x5a7   :  { %v1080_v44 = vadd.f32 %v1430_v51, %v1079_v39 }
 0x5a9   :  { %v1084_v46 = vsel %vm1083_vm3, %v1430_v51, %v1080_v44 }
 0x5aa   :  { %v1089_v8 = vsel %vm1086_vm4, %v1088_v45, %v1084_v46 }
 0x5ab   :  { %v1110_v29 = vmul.f32 %v1108_v41, %v1089_v8 }
 0x5ad   :  { %v1111_v17 = vadd.f32 %v1110_v29, %v1882_v0 }
 0x5af   :  { %1431 = vtanh.f32 %v1111_v17 }
 0x5b5   :  { %v1432_v14 = vpop.eup %1431 }
 0x5b6   :  { %v1114_v49 = vmul.f32 %v1432_v14, %v1113_v2 }
 0x5b8   :  { %v1935_v52 = vadd.f32 %v1117_v50, %v1114_v49 }
 0x5ba   :  { %v1125_v53 = vrot.slane %v1935_v52, 4  ;;  %v1119_v60 = vsel %vm256_vm7, %v1935_v52, -1000000.0  ;;  %v1243_v46 = vrot.slane %v1935_v52, 6 }
 0x5bb   :  { %v1121_v3 = vrot.slane %v1119_v60, 4 }
 0x5bc   :  { %1344 = vmatmul.msk.f32.vlgmr.msrb.gmra.mxu2 %vm257_vm15, %v1125_v53  ;;  %1345 = vmatmul.msk.f32.vlgmr.msrb.gmra.mxu3 %vm257_vm15, %v1125_v53 }
 0x5bd   :  { %1346 = vmatmul.msk.f32.vlgmr.msra.gmra.mxu0 %vm257_vm15, %v1125_v53  ;;  %v1945_v54 = vmax.f32 %v1928_v15, %v1121_v3 }
 0x63a   :  { %v1185_v1 = vpop.f32.mrf.mxu0 }
 0x63b   :  { %v1234_v27 = vadd.f32 %v1737_v21, %v1185_v1 }
 0x63d   :  { %v1236_v36 = vrot.slane %v1234_v27, 2 }
 0x63f   :  { %v1145_v55 = vpop.f32.mrf.mxu2  ;;  %v1165_v59 = vpop.f32.mrf.mxu3 }
 0x640   :  { %v1190_v61 = vrot.slane %v1145_v55, 2  ;;  %v1191_v62 = vrot.slane %v1165_v59, 2 }
 0x642   :  { %v1194_v5 = vadd.f32 %v1190_v61, %v1869_v7  ;;  %v1195_v6 = vadd.f32 %v1191_v62, %v1875_v11  ;;  %v1252_v7 = vld [vmem:[%s1982_s8] sm:$0xff] }
 0x643   :  { %1278 = vmatpush.msra.mxu1 %v1252_v7 }
 0x644   :  { %v1347_v4 = vmul.f32 -1.442695, %v1194_v5  ;;  %v1348_v9 = vmul.f32 -1.442695, %v1195_v6 }
 0x646   :  { %1433 = vpow2.f32 %v1347_v4 }
 0x647   :  { %1435 = vpow2.f32 %v1348_v9 }
 0x64c   :  { %v1434_v11 = vpop.eup %1433 }
 0x64d   :  { %v1436_v15 = vpop.eup %1435  ;;  %v1202_v16 = vadd.f32 1.0, %v1434_v11 }
 0x64e   :  { %v1203_v18 = vadd.f32 1.0, %v1436_v15 }
 0x64f   :  { %1437 = vrcp.f32 %v1202_v16  ;;  %v1215_v25 = vand.u32 2147483648, %v1202_v16  ;;  %v1213_v47 = vand.u32 2147483647, %v1202_v16  ;;  %vm1209_vm10 = vweird.f32 %v1202_v16 }
 0x650   :  { %1439 = vrcp.f32 %v1203_v18  ;;  %v1230_v39 = vand.u32 2147483648, %v1203_v18  ;;  %vm1224_vm13 = vweird.f32 %v1203_v18  ;;  %v1228_v40 = vand.u32 2147483647, %v1203_v18 }
 0x651   :  { %v1216_v34 = vor.u32 1.1754944e-38, %v1215_v25  ;;  %vm1214_vm12 = vcmp.eq.f32.partialorder %v1213_v47, 8.507059e+37 }
 0x652   :  { %v1231_v44 = vor.u32 1.1754944e-38, %v1230_v39  ;;  %vm1229_vm2 = vcmp.eq.f32.partialorder %v1228_v40, 8.507059e+37 }
 0x655   :  { %v1438_v19 = vpop.eup %1437 }
 0x656   :  { %v1440_v63 = vpop.eup %1439  ;;  %v1205_v56 = vmul.f32 %v1438_v19, %v1202_v16  ;;  %vm1210_vm9 = vweird.f32 %v1438_v19 }
 0x657   :  { %v1220_v22 = vmul.f32 %v1440_v63, %v1203_v18  ;;  %vm1211_vm11 = vmor %vm1209_vm10, %vm1210_vm9  ;;  %vm1225_vm0 = vweird.f32 %v1440_v63 }
 0x658   :  { %v1206_v23 = vsub.f32 1.0, %v1205_v56  ;;  %vm1226_vm14 = vmor %vm1224_vm13, %vm1225_vm0 }
 0x659   :  { %v1221_v57 = vsub.f32 1.0, %v1220_v22 }
 0x65a   :  { %v1207_v32 = vmul.f32 %v1438_v19, %v1206_v23 }
 0x65b   :  { %v1222_v26 = vmul.f32 %v1440_v63, %v1221_v57 }
 0x65c   :  { %v1208_v51 = vadd.f32 %v1438_v19, %v1207_v32 }
 0x65d   :  { %v1223_v38 = vadd.f32 %v1440_v63, %v1222_v26 }
 0x65e   :  { %v1212_v20 = vsel %vm1211_vm11, %v1438_v19, %v1208_v51 }
 0x65f   :  { %v1217_v37 = vsel %vm1214_vm12, %v1216_v34, %v1212_v20  ;;  %v1227_v43 = vsel %vm1226_vm14, %v1440_v63, %v1223_v38 }
 0x660   :  { %v1238_v42 = vmul.f32 %v1236_v36, %v1217_v37  ;;  %v1232_v45 = vsel %vm1229_vm2, %v1231_v44, %v1227_v43 }
 0x661   :  { %v1241_v41 = vsub.f32 1.0, %v1232_v45  ;;  %v1245_v24 = vmul.f32 %v1243_v46, %v1232_v45 }
 0x662   :  { %v1239_v21 = vadd.f32 %v1238_v42, %v1882_v0  ;;  %v1362_v0 = vld [vmem:[%s1983_s9] ss:$0 sm:$0xff] }
 0x664   :  { %1441 = vtanh.f32 %v1239_v21 }
 0x66a   :  { %v1442_v48 = vpop.eup %1441 }
 0x66b   :  { %v1242_v8 = vmul.f32 %v1442_v48, %v1241_v41 }
 0x66d   :  { %v1246_v29 = vadd.f32 %v1245_v24, %v1242_v8 }
 0x66f   :  { %v1247_v30 = vsel %vm256_vm7, %v1246_v29, -1000000.0 }
 0x670   :  { %v1249_v17 = vrot.slane %v1247_v30, 6 }
 0x672   :  { %v1251_v35 = vmax.f32 %v1945_v54, %v1249_v17 }
 0x674   :  { %1349 = vmatmul.msk.f32.vlgmr.msra.gmra.mxu1 %vm257_vm15, %v1251_v35 }
 0x6f1   :  { %v1280_v31 = vpop.f32.mrf.mxu1 }
 0x6f2   :  { %v1281_v28 = vadd.f32 %v1362_v0, %v1280_v31 }
 0x6f4   :  { %1283 = vst [vmem:[#allocation7] sm:$0x3] %v1281_v28 }
 0x6f5   :  { %1294 = dma.vmem_to_hbm [thread:$0]  %s1290_s26, 32, %s1292_s29, [#allocation4]  }
 0x6f6   :  { %1519 = dma.done.wait [#allocation4], 32  }
 0x6f7   :  { %1520 = vsyncadd [#allocation4], 4294967264 }
 0x6f8   :  { %1299 = vsyncpa [#allocation3], 1 }
 0x6f9   :  { %1300 = vsyncpa [#allocation6], 1 }
 0x6fa   :  { %1301 = vsyncpa [#allocation4], 1 }

</bundles_post_ra>
